<compile_context>
chip_gen: v7x
topology: tpu7x:2x2x1
jax: 0.10.0
libtpu: 0.0.40
codegen_flags: <defaults>
</compile_context>

<pallas_src>
import jax
import jax.numpy as jnp
from jax.experimental import pallas as pl
from jax.experimental.pallas import tpu as pltpu

INPUT_SIZE = 2
HIDDEN_SIZE = 32
OUTPUT_SIZE = 1

LANES = 128
SUBLANES = 8
CHUNK_ROWS = 64   # rows per in-kernel sub-chunk (multiple of 8; bounds live vregs)


def _round_up(a, m):
    return ((a + m - 1) // m) * m


def _default_max_block_rows():
    # 2048-row f32 tiles need (2 MiB in + 1 MiB out) * 2 buffers = 6 MiB VMEM
    # (fits v5e's 16 MiB default scoped limit); 4096-row tiles need 12 MiB
    # (fits the 32 MiB default on v6e/v7x).
    try:
        kind = jax.devices()[0].device_kind.lower()
    except Exception:
        return 2048
    if any(v in kind for v in ("v2", "v3", "v4", "v5")):
        return 2048
    return 4096


def mlp_kernel(w1_ref, b1_ref, w2_ref, b2_ref, x_ref, o_ref):
    # x_ref: [2, TR, 128] f32 (feature-stacked, lane-dense batch planes)
    # o_ref: [TR, 128] f32
    # SMEM scalars: w1_ref [64] (w1[i, j] at i*32 + j), b1_ref [32], w2_ref [32], b2_ref [1]
    tr = o_ref.shape[0]
    chunk = min(CHUNK_ROWS, tr)
    n_chunks = tr // chunk           # wrapper guarantees exact division

    def compute_rows(r):
        x0 = x_ref[0, pl.ds(r, chunk), :]
        x1 = x_ref[1, pl.ds(r, chunk), :]
        acc = jnp.full((chunk, LANES), b2_ref[0], jnp.float32)
        # Static unroll over the 32 hidden units: per unit 2 mul + 2 add + relu +
        # mul + add, all scalar-broadcast VPU ops with scalars straight from SMEM.
        for j in range(HIDDEN_SIZE):
            h = x0 * w1_ref[j] + x1 * w1_ref[HIDDEN_SIZE + j] + b1_ref[j]
            h = jnp.maximum(h, 0.0)
            acc = acc + h * w2_ref[j]
        o_ref[pl.ds(r, chunk), :] = acc.astype(o_ref.dtype)

    if n_chunks == 1:
        compute_rows(0)
    else:
        def chunk_body(c, carry):
            compute_rows(pl.multiple_of(c * chunk, chunk))
            return carry
        jax.lax.fori_loop(0, n_chunks, chunk_body, 0)


def sine_wave_predictor(x, w1, b1, w2, b2, *, max_block_rows=None, min_grid_steps=4):
    """Forward pass. x: [B, INPUT_SIZE] f32 -> [B, OUTPUT_SIZE] f32.

    w1: [INPUT_SIZE, HIDDEN_SIZE], b1: [HIDDEN_SIZE]
    w2: [HIDDEN_SIZE, OUTPUT_SIZE], b2: [OUTPUT_SIZE]
    (weights are the transpose of PyTorch's nn.Linear.weight layout)
    """
    B = x.shape[0]
    if max_block_rows is None:
        max_block_rows = _default_max_block_rows()
    # (8,128) rule: tile rows must be a multiple of 8.
    max_block_rows = max(SUBLANES, (max_block_rows // SUBLANES) * SUBLANES)
    min_grid_steps = max(1, min_grid_steps)

    # Lay the batch out as [rows, 128] lane-dense planes.
    rows = pl.cdiv(B, LANES)
    # Aim for >= min_grid_steps grid steps so v7x's 2nd TensorCore gets work and
    # the DMA prologue/epilogue is hidden, capped by the VMEM-sized tile.
    tr = min(max_block_rows, _round_up(pl.cdiv(rows, min_grid_steps), SUBLANES))
    if tr > CHUNK_ROWS:
        tr = (tr // CHUNK_ROWS) * CHUNK_ROWS     # keep in-kernel chunking exact
    rows_padded = _round_up(rows, tr)
    b_padded = rows_padded * LANES

    x = x.astype(jnp.float32)
    xp = x if B == b_padded else jnp.pad(x, ((0, b_padded - B), (0, 0)))
    # One transpose -> a single lane-dense [2, rows, 128] input stream.
    x01 = xp.T.reshape(INPUT_SIZE, rows_padded, LANES)

    w1f = w1.reshape(INPUT_SIZE * HIDDEN_SIZE).astype(jnp.float32)   # 1-D SMEM (256 B)
    b1f = b1.reshape(HIDDEN_SIZE).astype(jnp.float32)
    w2f = w2.reshape(HIDDEN_SIZE).astype(jnp.float32)
    b2f = b2.reshape(OUTPUT_SIZE).astype(jnp.float32)

    smem = pl.BlockSpec(memory_space=pltpu.MemorySpace.SMEM)
    grid = (rows_padded // tr,)

    yt = pl.pallas_call(
        mlp_kernel,
        out_shape=jax.ShapeDtypeStruct((rows_padded, LANES), jnp.float32),
        grid=grid,
        in_specs=[
            smem, smem, smem, smem,                                   # w1, b1, w2, b2 resident in SMEM
            pl.BlockSpec((INPUT_SIZE, tr, LANES), lambda i: (0, i, 0)),  # stacked x tile
        ],
        out_specs=pl.BlockSpec((tr, LANES), lambda i: (i, 0)),
        compiler_params=pltpu.CompilerParams(
            dimension_semantics=("parallel",)),                       # megacore split on v7x
    )(w1f, b1f, w2f, b2f, x01)

    return yt.reshape(b_padded, OUTPUT_SIZE)[:B]


def init_params(key):
    """Deterministic init matching nn.Linear shapes (stored pre-transposed)."""
    k1, k2, k3, k4 = jax.random.split(key, 4)
    bound1 = 1.0 / (INPUT_SIZE ** 0.5)
    bound2 = 1.0 / (HIDDEN_SIZE ** 0.5)
    w1 = jax.random.uniform(k1, (INPUT_SIZE, HIDDEN_SIZE), jnp.float32, -bound1, bound1)
    b1 = jax.random.uniform(k2, (HIDDEN_SIZE,), jnp.float32, -bound1, bound1)
    w2 = jax.random.uniform(k3, (HIDDEN_SIZE, OUTPUT_SIZE), jnp.float32, -bound2, bound2)
    b2 = jax.random.uniform(k4, (OUTPUT_SIZE,), jnp.float32, -bound2, bound2)
    return w1, b1, w2, b2


def reference(x, w1, b1, w2, b2):
    h = jnp.maximum(x @ w1 + b1[None, :], 0.0)
    return h @ w2 + b2[None, :]


if __name__ == "__main__":
    key = jax.random.PRNGKey(0)
    k_x, k_p = jax.random.split(key)

    # Small smoke test (single tile, single chunk).
    B = 8
    x = jax.random.normal(k_x, (B, INPUT_SIZE), jnp.float32)
    w1, b1, w2, b2 = init_params(k_p)

    out = jax.block_until_ready(sine_wave_predictor(x, w1, b1, w2, b2))
    ref = reference(x, w1, b1, w2, b2)
    assert out.shape == (B, OUTPUT_SIZE)
    assert jnp.allclose(out, ref, atol=1e-5, rtol=1e-5)

    # Multi-step grid + tail padding (tr=8 tiles, 5 grid steps).
    B2 = 5000
    x2 = jax.random.normal(jax.random.PRNGKey(1), (B2, INPUT_SIZE), jnp.float32)
    out2 = jax.block_until_ready(
        sine_wave_predictor(x2, w1, b1, w2, b2, max_block_rows=8))
    assert jnp.allclose(out2, reference(x2, w1, b1, w2, b2), atol=1e-5, rtol=1e-5)

    # Exercise the 64-row in-kernel chunk loop (tr=128 -> 2 chunks) + padding.
    B3 = 16000
    x3 = jax.random.normal(jax.random.PRNGKey(2), (B3, INPUT_SIZE), jnp.float32)
    out3 = jax.block_until_ready(
        sine_wave_predictor(x3, w1, b1, w2, b2, max_block_rows=128, min_grid_steps=1))
    assert jnp.allclose(out3, reference(x3, w1, b1, w2, b2), atol=1e-5, rtol=1e-5)

    print("KERNEL_OK")
</pallas_src>

<mosaic_0001>
module attributes {stable_mosaic.version = 11 : i64} {
  func.func @mlp_kernel(%arg0: i32, %arg1: memref<64xf32, #tpu.memory_space<smem>>, %arg2: memref<32xf32, #tpu.memory_space<smem>>, %arg3: memref<32xf32, #tpu.memory_space<smem>>, %arg4: memref<1xf32, #tpu.memory_space<smem>>, %arg5: memref<2x8x128xf32, #tpu.memory_space<vmem>>, %arg6: memref<8x128xf32, #tpu.memory_space<vmem>>) attributes {dimension_semantics = [#tpu.dimension_semantics<parallel>], iteration_bounds = array<i64: 1>, scalar_prefetch = 0 : i64, scratch_operands = 0 : i64, tpu.core_type = #tpu.core_type<tc>, window_params = [{transform_indices = @transform_0, window_bounds = array<i64: 64>}, {transform_indices = @transform_1, window_bounds = array<i64: 32>}, {transform_indices = @transform_2, window_bounds = array<i64: 32>}, {transform_indices = @transform_3, window_bounds = array<i64: 1>}, {transform_indices = @transform_4, window_bounds = array<i64: 2, 8, 128>}, {transform_indices = @transform_5, window_bounds = array<i64: 8, 128>}]} {
    %c0 = arith.constant 0 : index
    %c0_0 = arith.constant 0 : index
    %c0_1 = arith.constant 0 : index
    %0 = vector.load %arg5[%c0, %c0_0, %c0_1] : memref<2x8x128xf32, #tpu.memory_space<vmem>>, vector<1x8x128xf32>
    %1 = vector.shape_cast %0 : vector<1x8x128xf32> to vector<8x128xf32>
    %c1 = arith.constant 1 : index
    %c0_2 = arith.constant 0 : index
    %c0_3 = arith.constant 0 : index
    %2 = vector.load %arg5[%c1, %c0_2, %c0_3] : memref<2x8x128xf32, #tpu.memory_space<vmem>>, vector<1x8x128xf32>
    %3 = vector.shape_cast %2 : vector<1x8x128xf32> to vector<8x128xf32>
    %c0_4 = arith.constant 0 : index
    %4 = memref.load %arg4[%c0_4] : memref<1xf32, #tpu.memory_space<smem>>
    %5 = vector.broadcast %4 : f32 to vector<8x128xf32>
    %c0_5 = arith.constant 0 : index
    %6 = memref.load %arg1[%c0_5] : memref<64xf32, #tpu.memory_space<smem>>
    %7 = vector.broadcast %6 : f32 to vector<8x128xf32>
    %8 = arith.mulf %1, %7 : vector<8x128xf32>
    %c32 = arith.constant 32 : index
    %9 = memref.load %arg1[%c32] : memref<64xf32, #tpu.memory_space<smem>>
    %10 = vector.broadcast %9 : f32 to vector<8x128xf32>
    %11 = arith.mulf %3, %10 : vector<8x128xf32>
    %12 = arith.addf %8, %11 : vector<8x128xf32>
    %c0_6 = arith.constant 0 : index
    %13 = memref.load %arg2[%c0_6] : memref<32xf32, #tpu.memory_space<smem>>
    %14 = vector.broadcast %13 : f32 to vector<8x128xf32>
    %15 = arith.addf %12, %14 : vector<8x128xf32>
    %cst = arith.constant 0.000000e+00 : f32
    %16 = vector.broadcast %cst : f32 to vector<8x128xf32>
    %17 = arith.maximumf %15, %16 : vector<8x128xf32>
    %c0_7 = arith.constant 0 : index
    %18 = memref.load %arg3[%c0_7] : memref<32xf32, #tpu.memory_space<smem>>
    %19 = vector.broadcast %18 : f32 to vector<8x128xf32>
    %20 = arith.mulf %17, %19 : vector<8x128xf32>
    %21 = arith.addf %5, %20 : vector<8x128xf32>
    %c1_8 = arith.constant 1 : index
    %22 = memref.load %arg1[%c1_8] : memref<64xf32, #tpu.memory_space<smem>>
    %23 = vector.broadcast %22 : f32 to vector<8x128xf32>
    %24 = arith.mulf %1, %23 : vector<8x128xf32>
    %c33 = arith.constant 33 : index
    %25 = memref.load %arg1[%c33] : memref<64xf32, #tpu.memory_space<smem>>
    %26 = vector.broadcast %25 : f32 to vector<8x128xf32>
    %27 = arith.mulf %3, %26 : vector<8x128xf32>
    %28 = arith.addf %24, %27 : vector<8x128xf32>
    %c1_9 = arith.constant 1 : index
    %29 = memref.load %arg2[%c1_9] : memref<32xf32, #tpu.memory_space<smem>>
    %30 = vector.broadcast %29 : f32 to vector<8x128xf32>
    %31 = arith.addf %28, %30 : vector<8x128xf32>
    %cst_10 = arith.constant 0.000000e+00 : f32
    %32 = vector.broadcast %cst_10 : f32 to vector<8x128xf32>
    %33 = arith.maximumf %31, %32 : vector<8x128xf32>
    %c1_11 = arith.constant 1 : index
    %34 = memref.load %arg3[%c1_11] : memref<32xf32, #tpu.memory_space<smem>>
    %35 = vector.broadcast %34 : f32 to vector<8x128xf32>
    %36 = arith.mulf %33, %35 : vector<8x128xf32>
    %37 = arith.addf %21, %36 : vector<8x128xf32>
    %c2 = arith.constant 2 : index
    %38 = memref.load %arg1[%c2] : memref<64xf32, #tpu.memory_space<smem>>
    %39 = vector.broadcast %38 : f32 to vector<8x128xf32>
    %40 = arith.mulf %1, %39 : vector<8x128xf32>
    %c34 = arith.constant 34 : index
    %41 = memref.load %arg1[%c34] : memref<64xf32, #tpu.memory_space<smem>>
    %42 = vector.broadcast %41 : f32 to vector<8x128xf32>
    %43 = arith.mulf %3, %42 : vector<8x128xf32>
    %44 = arith.addf %40, %43 : vector<8x128xf32>
    %c2_12 = arith.constant 2 : index
    %45 = memref.load %arg2[%c2_12] : memref<32xf32, #tpu.memory_space<smem>>
    %46 = vector.broadcast %45 : f32 to vector<8x128xf32>
    %47 = arith.addf %44, %46 : vector<8x128xf32>
    %cst_13 = arith.constant 0.000000e+00 : f32
    %48 = vector.broadcast %cst_13 : f32 to vector<8x128xf32>
    %49 = arith.maximumf %47, %48 : vector<8x128xf32>
    %c2_14 = arith.constant 2 : index
    %50 = memref.load %arg3[%c2_14] : memref<32xf32, #tpu.memory_space<smem>>
    %51 = vector.broadcast %50 : f32 to vector<8x128xf32>
    %52 = arith.mulf %49, %51 : vector<8x128xf32>
    %53 = arith.addf %37, %52 : vector<8x128xf32>
    %c3 = arith.constant 3 : index
    %54 = memref.load %arg1[%c3] : memref<64xf32, #tpu.memory_space<smem>>
    %55 = vector.broadcast %54 : f32 to vector<8x128xf32>
    %56 = arith.mulf %1, %55 : vector<8x128xf32>
    %c35 = arith.constant 35 : index
    %57 = memref.load %arg1[%c35] : memref<64xf32, #tpu.memory_space<smem>>
    %58 = vector.broadcast %57 : f32 to vector<8x128xf32>
    %59 = arith.mulf %3, %58 : vector<8x128xf32>
    %60 = arith.addf %56, %59 : vector<8x128xf32>
    %c3_15 = arith.constant 3 : index
    %61 = memref.load %arg2[%c3_15] : memref<32xf32, #tpu.memory_space<smem>>
    %62 = vector.broadcast %61 : f32 to vector<8x128xf32>
    %63 = arith.addf %60, %62 : vector<8x128xf32>
    %cst_16 = arith.constant 0.000000e+00 : f32
    %64 = vector.broadcast %cst_16 : f32 to vector<8x128xf32>
    %65 = arith.maximumf %63, %64 : vector<8x128xf32>
    %c3_17 = arith.constant 3 : index
    %66 = memref.load %arg3[%c3_17] : memref<32xf32, #tpu.memory_space<smem>>
    %67 = vector.broadcast %66 : f32 to vector<8x128xf32>
    %68 = arith.mulf %65, %67 : vector<8x128xf32>
    %69 = arith.addf %53, %68 : vector<8x128xf32>
    %c4 = arith.constant 4 : index
    %70 = memref.load %arg1[%c4] : memref<64xf32, #tpu.memory_space<smem>>
    %71 = vector.broadcast %70 : f32 to vector<8x128xf32>
    %72 = arith.mulf %1, %71 : vector<8x128xf32>
    %c36 = arith.constant 36 : index
    %73 = memref.load %arg1[%c36] : memref<64xf32, #tpu.memory_space<smem>>
    %74 = vector.broadcast %73 : f32 to vector<8x128xf32>
    %75 = arith.mulf %3, %74 : vector<8x128xf32>
    %76 = arith.addf %72, %75 : vector<8x128xf32>
    %c4_18 = arith.constant 4 : index
    %77 = memref.load %arg2[%c4_18] : memref<32xf32, #tpu.memory_space<smem>>
    %78 = vector.broadcast %77 : f32 to vector<8x128xf32>
    %79 = arith.addf %76, %78 : vector<8x128xf32>
    %cst_19 = arith.constant 0.000000e+00 : f32
    %80 = vector.broadcast %cst_19 : f32 to vector<8x128xf32>
    %81 = arith.maximumf %79, %80 : vector<8x128xf32>
    %c4_20 = arith.constant 4 : index
    %82 = memref.load %arg3[%c4_20] : memref<32xf32, #tpu.memory_space<smem>>
    %83 = vector.broadcast %82 : f32 to vector<8x128xf32>
    %84 = arith.mulf %81, %83 : vector<8x128xf32>
    %85 = arith.addf %69, %84 : vector<8x128xf32>
    %c5 = arith.constant 5 : index
    %86 = memref.load %arg1[%c5] : memref<64xf32, #tpu.memory_space<smem>>
    %87 = vector.broadcast %86 : f32 to vector<8x128xf32>
    %88 = arith.mulf %1, %87 : vector<8x128xf32>
    %c37 = arith.constant 37 : index
    %89 = memref.load %arg1[%c37] : memref<64xf32, #tpu.memory_space<smem>>
    %90 = vector.broadcast %89 : f32 to vector<8x128xf32>
    %91 = arith.mulf %3, %90 : vector<8x128xf32>
    %92 = arith.addf %88, %91 : vector<8x128xf32>
    %c5_21 = arith.constant 5 : index
    %93 = memref.load %arg2[%c5_21] : memref<32xf32, #tpu.memory_space<smem>>
    %94 = vector.broadcast %93 : f32 to vector<8x128xf32>
    %95 = arith.addf %92, %94 : vector<8x128xf32>
    %cst_22 = arith.constant 0.000000e+00 : f32
    %96 = vector.broadcast %cst_22 : f32 to vector<8x128xf32>
    %97 = arith.maximumf %95, %96 : vector<8x128xf32>
    %c5_23 = arith.constant 5 : index
    %98 = memref.load %arg3[%c5_23] : memref<32xf32, #tpu.memory_space<smem>>
    %99 = vector.broadcast %98 : f32 to vector<8x128xf32>
    %100 = arith.mulf %97, %99 : vector<8x128xf32>
    %101 = arith.addf %85, %100 : vector<8x128xf32>
    %c6 = arith.constant 6 : index
    %102 = memref.load %arg1[%c6] : memref<64xf32, #tpu.memory_space<smem>>
    %103 = vector.broadcast %102 : f32 to vector<8x128xf32>
    %104 = arith.mulf %1, %103 : vector<8x128xf32>
    %c38 = arith.constant 38 : index
    %105 = memref.load %arg1[%c38] : memref<64xf32, #tpu.memory_space<smem>>
    %106 = vector.broadcast %105 : f32 to vector<8x128xf32>
    %107 = arith.mulf %3, %106 : vector<8x128xf32>
    %108 = arith.addf %104, %107 : vector<8x128xf32>
    %c6_24 = arith.constant 6 : index
    %109 = memref.load %arg2[%c6_24] : memref<32xf32, #tpu.memory_space<smem>>
    %110 = vector.broadcast %109 : f32 to vector<8x128xf32>
    %111 = arith.addf %108, %110 : vector<8x128xf32>
    %cst_25 = arith.constant 0.000000e+00 : f32
    %112 = vector.broadcast %cst_25 : f32 to vector<8x128xf32>
    %113 = arith.maximumf %111, %112 : vector<8x128xf32>
    %c6_26 = arith.constant 6 : index
    %114 = memref.load %arg3[%c6_26] : memref<32xf32, #tpu.memory_space<smem>>
    %115 = vector.broadcast %114 : f32 to vector<8x128xf32>
    %116 = arith.mulf %113, %115 : vector<8x128xf32>
    %117 = arith.addf %101, %116 : vector<8x128xf32>
    %c7 = arith.constant 7 : index
    %118 = memref.load %arg1[%c7] : memref<64xf32, #tpu.memory_space<smem>>
    %119 = vector.broadcast %118 : f32 to vector<8x128xf32>
    %120 = arith.mulf %1, %119 : vector<8x128xf32>
    %c39 = arith.constant 39 : index
    %121 = memref.load %arg1[%c39] : memref<64xf32, #tpu.memory_space<smem>>
    %122 = vector.broadcast %121 : f32 to vector<8x128xf32>
    %123 = arith.mulf %3, %122 : vector<8x128xf32>
    %124 = arith.addf %120, %123 : vector<8x128xf32>
    %c7_27 = arith.constant 7 : index
    %125 = memref.load %arg2[%c7_27] : memref<32xf32, #tpu.memory_space<smem>>
    %126 = vector.broadcast %125 : f32 to vector<8x128xf32>
    %127 = arith.addf %124, %126 : vector<8x128xf32>
    %cst_28 = arith.constant 0.000000e+00 : f32
    %128 = vector.broadcast %cst_28 : f32 to vector<8x128xf32>
    %129 = arith.maximumf %127, %128 : vector<8x128xf32>
    %c7_29 = arith.constant 7 : index
    %130 = memref.load %arg3[%c7_29] : memref<32xf32, #tpu.memory_space<smem>>
    %131 = vector.broadcast %130 : f32 to vector<8x128xf32>
    %132 = arith.mulf %129, %131 : vector<8x128xf32>
    %133 = arith.addf %117, %132 : vector<8x128xf32>
    %c8 = arith.constant 8 : index
    %134 = memref.load %arg1[%c8] : memref<64xf32, #tpu.memory_space<smem>>
    %135 = vector.broadcast %134 : f32 to vector<8x128xf32>
    %136 = arith.mulf %1, %135 : vector<8x128xf32>
    %c40 = arith.constant 40 : index
    %137 = memref.load %arg1[%c40] : memref<64xf32, #tpu.memory_space<smem>>
    %138 = vector.broadcast %137 : f32 to vector<8x128xf32>
    %139 = arith.mulf %3, %138 : vector<8x128xf32>
    %140 = arith.addf %136, %139 : vector<8x128xf32>
    %c8_30 = arith.constant 8 : index
    %141 = memref.load %arg2[%c8_30] : memref<32xf32, #tpu.memory_space<smem>>
    %142 = vector.broadcast %141 : f32 to vector<8x128xf32>
    %143 = arith.addf %140, %142 : vector<8x128xf32>
    %cst_31 = arith.constant 0.000000e+00 : f32
    %144 = vector.broadcast %cst_31 : f32 to vector<8x128xf32>
    %145 = arith.maximumf %143, %144 : vector<8x128xf32>
    %c8_32 = arith.constant 8 : index
    %146 = memref.load %arg3[%c8_32] : memref<32xf32, #tpu.memory_space<smem>>
    %147 = vector.broadcast %146 : f32 to vector<8x128xf32>
    %148 = arith.mulf %145, %147 : vector<8x128xf32>
    %149 = arith.addf %133, %148 : vector<8x128xf32>
    %c9 = arith.constant 9 : index
    %150 = memref.load %arg1[%c9] : memref<64xf32, #tpu.memory_space<smem>>
    %151 = vector.broadcast %150 : f32 to vector<8x128xf32>
    %152 = arith.mulf %1, %151 : vector<8x128xf32>
    %c41 = arith.constant 41 : index
    %153 = memref.load %arg1[%c41] : memref<64xf32, #tpu.memory_space<smem>>
    %154 = vector.broadcast %153 : f32 to vector<8x128xf32>
    %155 = arith.mulf %3, %154 : vector<8x128xf32>
    %156 = arith.addf %152, %155 : vector<8x128xf32>
    %c9_33 = arith.constant 9 : index
    %157 = memref.load %arg2[%c9_33] : memref<32xf32, #tpu.memory_space<smem>>
    %158 = vector.broadcast %157 : f32 to vector<8x128xf32>
    %159 = arith.addf %156, %158 : vector<8x128xf32>
    %cst_34 = arith.constant 0.000000e+00 : f32
    %160 = vector.broadcast %cst_34 : f32 to vector<8x128xf32>
    %161 = arith.maximumf %159, %160 : vector<8x128xf32>
    %c9_35 = arith.constant 9 : index
    %162 = memref.load %arg3[%c9_35] : memref<32xf32, #tpu.memory_space<smem>>
    %163 = vector.broadcast %162 : f32 to vector<8x128xf32>
    %164 = arith.mulf %161, %163 : vector<8x128xf32>
    %165 = arith.addf %149, %164 : vector<8x128xf32>
    %c10 = arith.constant 10 : index
    %166 = memref.load %arg1[%c10] : memref<64xf32, #tpu.memory_space<smem>>
    %167 = vector.broadcast %166 : f32 to vector<8x128xf32>
    %168 = arith.mulf %1, %167 : vector<8x128xf32>
    %c42 = arith.constant 42 : index
    %169 = memref.load %arg1[%c42] : memref<64xf32, #tpu.memory_space<smem>>
    %170 = vector.broadcast %169 : f32 to vector<8x128xf32>
    %171 = arith.mulf %3, %170 : vector<8x128xf32>
    %172 = arith.addf %168, %171 : vector<8x128xf32>
    %c10_36 = arith.constant 10 : index
    %173 = memref.load %arg2[%c10_36] : memref<32xf32, #tpu.memory_space<smem>>
    %174 = vector.broadcast %173 : f32 to vector<8x128xf32>
    %175 = arith.addf %172, %174 : vector<8x128xf32>
    %cst_37 = arith.constant 0.000000e+00 : f32
    %176 = vector.broadcast %cst_37 : f32 to vector<8x128xf32>
    %177 = arith.maximumf %175, %176 : vector<8x128xf32>
    %c10_38 = arith.constant 10 : index
    %178 = memref.load %arg3[%c10_38] : memref<32xf32, #tpu.memory_space<smem>>
    %179 = vector.broadcast %178 : f32 to vector<8x128xf32>
    %180 = arith.mulf %177, %179 : vector<8x128xf32>
    %181 = arith.addf %165, %180 : vector<8x128xf32>
    %c11 = arith.constant 11 : index
    %182 = memref.load %arg1[%c11] : memref<64xf32, #tpu.memory_space<smem>>
    %183 = vector.broadcast %182 : f32 to vector<8x128xf32>
    %184 = arith.mulf %1, %183 : vector<8x128xf32>
    %c43 = arith.constant 43 : index
    %185 = memref.load %arg1[%c43] : memref<64xf32, #tpu.memory_space<smem>>
    %186 = vector.broadcast %185 : f32 to vector<8x128xf32>
    %187 = arith.mulf %3, %186 : vector<8x128xf32>
    %188 = arith.addf %184, %187 : vector<8x128xf32>
    %c11_39 = arith.constant 11 : index
    %189 = memref.load %arg2[%c11_39] : memref<32xf32, #tpu.memory_space<smem>>
    %190 = vector.broadcast %189 : f32 to vector<8x128xf32>
    %191 = arith.addf %188, %190 : vector<8x128xf32>
    %cst_40 = arith.constant 0.000000e+00 : f32
    %192 = vector.broadcast %cst_40 : f32 to vector<8x128xf32>
    %193 = arith.maximumf %191, %192 : vector<8x128xf32>
    %c11_41 = arith.constant 11 : index
    %194 = memref.load %arg3[%c11_41] : memref<32xf32, #tpu.memory_space<smem>>
    %195 = vector.broadcast %194 : f32 to vector<8x128xf32>
    %196 = arith.mulf %193, %195 : vector<8x128xf32>
    %197 = arith.addf %181, %196 : vector<8x128xf32>
    %c12 = arith.constant 12 : index
    %198 = memref.load %arg1[%c12] : memref<64xf32, #tpu.memory_space<smem>>
    %199 = vector.broadcast %198 : f32 to vector<8x128xf32>
    %200 = arith.mulf %1, %199 : vector<8x128xf32>
    %c44 = arith.constant 44 : index
    %201 = memref.load %arg1[%c44] : memref<64xf32, #tpu.memory_space<smem>>
    %202 = vector.broadcast %201 : f32 to vector<8x128xf32>
    %203 = arith.mulf %3, %202 : vector<8x128xf32>
    %204 = arith.addf %200, %203 : vector<8x128xf32>
    %c12_42 = arith.constant 12 : index
    %205 = memref.load %arg2[%c12_42] : memref<32xf32, #tpu.memory_space<smem>>
    %206 = vector.broadcast %205 : f32 to vector<8x128xf32>
    %207 = arith.addf %204, %206 : vector<8x128xf32>
    %cst_43 = arith.constant 0.000000e+00 : f32
    %208 = vector.broadcast %cst_43 : f32 to vector<8x128xf32>
    %209 = arith.maximumf %207, %208 : vector<8x128xf32>
    %c12_44 = arith.constant 12 : index
    %210 = memref.load %arg3[%c12_44] : memref<32xf32, #tpu.memory_space<smem>>
    %211 = vector.broadcast %210 : f32 to vector<8x128xf32>
    %212 = arith.mulf %209, %211 : vector<8x128xf32>
    %213 = arith.addf %197, %212 : vector<8x128xf32>
    %c13 = arith.constant 13 : index
    %214 = memref.load %arg1[%c13] : memref<64xf32, #tpu.memory_space<smem>>
    %215 = vector.broadcast %214 : f32 to vector<8x128xf32>
    %216 = arith.mulf %1, %215 : vector<8x128xf32>
    %c45 = arith.constant 45 : index
    %217 = memref.load %arg1[%c45] : memref<64xf32, #tpu.memory_space<smem>>
    %218 = vector.broadcast %217 : f32 to vector<8x128xf32>
    %219 = arith.mulf %3, %218 : vector<8x128xf32>
    %220 = arith.addf %216, %219 : vector<8x128xf32>
    %c13_45 = arith.constant 13 : index
    %221 = memref.load %arg2[%c13_45] : memref<32xf32, #tpu.memory_space<smem>>
    %222 = vector.broadcast %221 : f32 to vector<8x128xf32>
    %223 = arith.addf %220, %222 : vector<8x128xf32>
    %cst_46 = arith.constant 0.000000e+00 : f32
    %224 = vector.broadcast %cst_46 : f32 to vector<8x128xf32>
    %225 = arith.maximumf %223, %224 : vector<8x128xf32>
    %c13_47 = arith.constant 13 : index
    %226 = memref.load %arg3[%c13_47] : memref<32xf32, #tpu.memory_space<smem>>
    %227 = vector.broadcast %226 : f32 to vector<8x128xf32>
    %228 = arith.mulf %225, %227 : vector<8x128xf32>
    %229 = arith.addf %213, %228 : vector<8x128xf32>
    %c14 = arith.constant 14 : index
    %230 = memref.load %arg1[%c14] : memref<64xf32, #tpu.memory_space<smem>>
    %231 = vector.broadcast %230 : f32 to vector<8x128xf32>
    %232 = arith.mulf %1, %231 : vector<8x128xf32>
    %c46 = arith.constant 46 : index
    %233 = memref.load %arg1[%c46] : memref<64xf32, #tpu.memory_space<smem>>
    %234 = vector.broadcast %233 : f32 to vector<8x128xf32>
    %235 = arith.mulf %3, %234 : vector<8x128xf32>
    %236 = arith.addf %232, %235 : vector<8x128xf32>
    %c14_48 = arith.constant 14 : index
    %237 = memref.load %arg2[%c14_48] : memref<32xf32, #tpu.memory_space<smem>>
    %238 = vector.broadcast %237 : f32 to vector<8x128xf32>
    %239 = arith.addf %236, %238 : vector<8x128xf32>
    %cst_49 = arith.constant 0.000000e+00 : f32
    %240 = vector.broadcast %cst_49 : f32 to vector<8x128xf32>
    %241 = arith.maximumf %239, %240 : vector<8x128xf32>
    %c14_50 = arith.constant 14 : index
    %242 = memref.load %arg3[%c14_50] : memref<32xf32, #tpu.memory_space<smem>>
    %243 = vector.broadcast %242 : f32 to vector<8x128xf32>
    %244 = arith.mulf %241, %243 : vector<8x128xf32>
    %245 = arith.addf %229, %244 : vector<8x128xf32>
    %c15 = arith.constant 15 : index
    %246 = memref.load %arg1[%c15] : memref<64xf32, #tpu.memory_space<smem>>
    %247 = vector.broadcast %246 : f32 to vector<8x128xf32>
    %248 = arith.mulf %1, %247 : vector<8x128xf32>
    %c47 = arith.constant 47 : index
    %249 = memref.load %arg1[%c47] : memref<64xf32, #tpu.memory_space<smem>>
    %250 = vector.broadcast %249 : f32 to vector<8x128xf32>
    %251 = arith.mulf %3, %250 : vector<8x128xf32>
    %252 = arith.addf %248, %251 : vector<8x128xf32>
    %c15_51 = arith.constant 15 : index
    %253 = memref.load %arg2[%c15_51] : memref<32xf32, #tpu.memory_space<smem>>
    %254 = vector.broadcast %253 : f32 to vector<8x128xf32>
    %255 = arith.addf %252, %254 : vector<8x128xf32>
    %cst_52 = arith.constant 0.000000e+00 : f32
    %256 = vector.broadcast %cst_52 : f32 to vector<8x128xf32>
    %257 = arith.maximumf %255, %256 : vector<8x128xf32>
    %c15_53 = arith.constant 15 : index
    %258 = memref.load %arg3[%c15_53] : memref<32xf32, #tpu.memory_space<smem>>
    %259 = vector.broadcast %258 : f32 to vector<8x128xf32>
    %260 = arith.mulf %257, %259 : vector<8x128xf32>
    %261 = arith.addf %245, %260 : vector<8x128xf32>
    %c16 = arith.constant 16 : index
    %262 = memref.load %arg1[%c16] : memref<64xf32, #tpu.memory_space<smem>>
    %263 = vector.broadcast %262 : f32 to vector<8x128xf32>
    %264 = arith.mulf %1, %263 : vector<8x128xf32>
    %c48 = arith.constant 48 : index
    %265 = memref.load %arg1[%c48] : memref<64xf32, #tpu.memory_space<smem>>
    %266 = vector.broadcast %265 : f32 to vector<8x128xf32>
    %267 = arith.mulf %3, %266 : vector<8x128xf32>
    %268 = arith.addf %264, %267 : vector<8x128xf32>
    %c16_54 = arith.constant 16 : index
    %269 = memref.load %arg2[%c16_54] : memref<32xf32, #tpu.memory_space<smem>>
    %270 = vector.broadcast %269 : f32 to vector<8x128xf32>
    %271 = arith.addf %268, %270 : vector<8x128xf32>
    %cst_55 = arith.constant 0.000000e+00 : f32
    %272 = vector.broadcast %cst_55 : f32 to vector<8x128xf32>
    %273 = arith.maximumf %271, %272 : vector<8x128xf32>
    %c16_56 = arith.constant 16 : index
    %274 = memref.load %arg3[%c16_56] : memref<32xf32, #tpu.memory_space<smem>>
    %275 = vector.broadcast %274 : f32 to vector<8x128xf32>
    %276 = arith.mulf %273, %275 : vector<8x128xf32>
    %277 = arith.addf %261, %276 : vector<8x128xf32>
    %c17 = arith.constant 17 : index
    %278 = memref.load %arg1[%c17] : memref<64xf32, #tpu.memory_space<smem>>
    %279 = vector.broadcast %278 : f32 to vector<8x128xf32>
    %280 = arith.mulf %1, %279 : vector<8x128xf32>
    %c49 = arith.constant 49 : index
    %281 = memref.load %arg1[%c49] : memref<64xf32, #tpu.memory_space<smem>>
    %282 = vector.broadcast %281 : f32 to vector<8x128xf32>
    %283 = arith.mulf %3, %282 : vector<8x128xf32>
    %284 = arith.addf %280, %283 : vector<8x128xf32>
    %c17_57 = arith.constant 17 : index
    %285 = memref.load %arg2[%c17_57] : memref<32xf32, #tpu.memory_space<smem>>
    %286 = vector.broadcast %285 : f32 to vector<8x128xf32>
    %287 = arith.addf %284, %286 : vector<8x128xf32>
    %cst_58 = arith.constant 0.000000e+00 : f32
    %288 = vector.broadcast %cst_58 : f32 to vector<8x128xf32>
    %289 = arith.maximumf %287, %288 : vector<8x128xf32>
    %c17_59 = arith.constant 17 : index
    %290 = memref.load %arg3[%c17_59] : memref<32xf32, #tpu.memory_space<smem>>
    %291 = vector.broadcast %290 : f32 to vector<8x128xf32>
    %292 = arith.mulf %289, %291 : vector<8x128xf32>
    %293 = arith.addf %277, %292 : vector<8x128xf32>
    %c18 = arith.constant 18 : index
    %294 = memref.load %arg1[%c18] : memref<64xf32, #tpu.memory_space<smem>>
    %295 = vector.broadcast %294 : f32 to vector<8x128xf32>
    %296 = arith.mulf %1, %295 : vector<8x128xf32>
    %c50 = arith.constant 50 : index
    %297 = memref.load %arg1[%c50] : memref<64xf32, #tpu.memory_space<smem>>
    %298 = vector.broadcast %297 : f32 to vector<8x128xf32>
    %299 = arith.mulf %3, %298 : vector<8x128xf32>
    %300 = arith.addf %296, %299 : vector<8x128xf32>
    %c18_60 = arith.constant 18 : index
    %301 = memref.load %arg2[%c18_60] : memref<32xf32, #tpu.memory_space<smem>>
    %302 = vector.broadcast %301 : f32 to vector<8x128xf32>
    %303 = arith.addf %300, %302 : vector<8x128xf32>
    %cst_61 = arith.constant 0.000000e+00 : f32
    %304 = vector.broadcast %cst_61 : f32 to vector<8x128xf32>
    %305 = arith.maximumf %303, %304 : vector<8x128xf32>
    %c18_62 = arith.constant 18 : index
    %306 = memref.load %arg3[%c18_62] : memref<32xf32, #tpu.memory_space<smem>>
    %307 = vector.broadcast %306 : f32 to vector<8x128xf32>
    %308 = arith.mulf %305, %307 : vector<8x128xf32>
    %309 = arith.addf %293, %308 : vector<8x128xf32>
    %c19 = arith.constant 19 : index
    %310 = memref.load %arg1[%c19] : memref<64xf32, #tpu.memory_space<smem>>
    %311 = vector.broadcast %310 : f32 to vector<8x128xf32>
    %312 = arith.mulf %1, %311 : vector<8x128xf32>
    %c51 = arith.constant 51 : index
    %313 = memref.load %arg1[%c51] : memref<64xf32, #tpu.memory_space<smem>>
    %314 = vector.broadcast %313 : f32 to vector<8x128xf32>
    %315 = arith.mulf %3, %314 : vector<8x128xf32>
    %316 = arith.addf %312, %315 : vector<8x128xf32>
    %c19_63 = arith.constant 19 : index
    %317 = memref.load %arg2[%c19_63] : memref<32xf32, #tpu.memory_space<smem>>
    %318 = vector.broadcast %317 : f32 to vector<8x128xf32>
    %319 = arith.addf %316, %318 : vector<8x128xf32>
    %cst_64 = arith.constant 0.000000e+00 : f32
    %320 = vector.broadcast %cst_64 : f32 to vector<8x128xf32>
    %321 = arith.maximumf %319, %320 : vector<8x128xf32>
    %c19_65 = arith.constant 19 : index
    %322 = memref.load %arg3[%c19_65] : memref<32xf32, #tpu.memory_space<smem>>
    %323 = vector.broadcast %322 : f32 to vector<8x128xf32>
    %324 = arith.mulf %321, %323 : vector<8x128xf32>
    %325 = arith.addf %309, %324 : vector<8x128xf32>
    %c20 = arith.constant 20 : index
    %326 = memref.load %arg1[%c20] : memref<64xf32, #tpu.memory_space<smem>>
    %327 = vector.broadcast %326 : f32 to vector<8x128xf32>
    %328 = arith.mulf %1, %327 : vector<8x128xf32>
    %c52 = arith.constant 52 : index
    %329 = memref.load %arg1[%c52] : memref<64xf32, #tpu.memory_space<smem>>
    %330 = vector.broadcast %329 : f32 to vector<8x128xf32>
    %331 = arith.mulf %3, %330 : vector<8x128xf32>
    %332 = arith.addf %328, %331 : vector<8x128xf32>
    %c20_66 = arith.constant 20 : index
    %333 = memref.load %arg2[%c20_66] : memref<32xf32, #tpu.memory_space<smem>>
    %334 = vector.broadcast %333 : f32 to vector<8x128xf32>
    %335 = arith.addf %332, %334 : vector<8x128xf32>
    %cst_67 = arith.constant 0.000000e+00 : f32
    %336 = vector.broadcast %cst_67 : f32 to vector<8x128xf32>
    %337 = arith.maximumf %335, %336 : vector<8x128xf32>
    %c20_68 = arith.constant 20 : index
    %338 = memref.load %arg3[%c20_68] : memref<32xf32, #tpu.memory_space<smem>>
    %339 = vector.broadcast %338 : f32 to vector<8x128xf32>
    %340 = arith.mulf %337, %339 : vector<8x128xf32>
    %341 = arith.addf %325, %340 : vector<8x128xf32>
    %c21 = arith.constant 21 : index
    %342 = memref.load %arg1[%c21] : memref<64xf32, #tpu.memory_space<smem>>
    %343 = vector.broadcast %342 : f32 to vector<8x128xf32>
    %344 = arith.mulf %1, %343 : vector<8x128xf32>
    %c53 = arith.constant 53 : index
    %345 = memref.load %arg1[%c53] : memref<64xf32, #tpu.memory_space<smem>>
    %346 = vector.broadcast %345 : f32 to vector<8x128xf32>
    %347 = arith.mulf %3, %346 : vector<8x128xf32>
    %348 = arith.addf %344, %347 : vector<8x128xf32>
    %c21_69 = arith.constant 21 : index
    %349 = memref.load %arg2[%c21_69] : memref<32xf32, #tpu.memory_space<smem>>
    %350 = vector.broadcast %349 : f32 to vector<8x128xf32>
    %351 = arith.addf %348, %350 : vector<8x128xf32>
    %cst_70 = arith.constant 0.000000e+00 : f32
    %352 = vector.broadcast %cst_70 : f32 to vector<8x128xf32>
    %353 = arith.maximumf %351, %352 : vector<8x128xf32>
    %c21_71 = arith.constant 21 : index
    %354 = memref.load %arg3[%c21_71] : memref<32xf32, #tpu.memory_space<smem>>
    %355 = vector.broadcast %354 : f32 to vector<8x128xf32>
    %356 = arith.mulf %353, %355 : vector<8x128xf32>
    %357 = arith.addf %341, %356 : vector<8x128xf32>
    %c22 = arith.constant 22 : index
    %358 = memref.load %arg1[%c22] : memref<64xf32, #tpu.memory_space<smem>>
    %359 = vector.broadcast %358 : f32 to vector<8x128xf32>
    %360 = arith.mulf %1, %359 : vector<8x128xf32>
    %c54 = arith.constant 54 : index
    %361 = memref.load %arg1[%c54] : memref<64xf32, #tpu.memory_space<smem>>
    %362 = vector.broadcast %361 : f32 to vector<8x128xf32>
    %363 = arith.mulf %3, %362 : vector<8x128xf32>
    %364 = arith.addf %360, %363 : vector<8x128xf32>
    %c22_72 = arith.constant 22 : index
    %365 = memref.load %arg2[%c22_72] : memref<32xf32, #tpu.memory_space<smem>>
    %366 = vector.broadcast %365 : f32 to vector<8x128xf32>
    %367 = arith.addf %364, %366 : vector<8x128xf32>
    %cst_73 = arith.constant 0.000000e+00 : f32
    %368 = vector.broadcast %cst_73 : f32 to vector<8x128xf32>
    %369 = arith.maximumf %367, %368 : vector<8x128xf32>
    %c22_74 = arith.constant 22 : index
    %370 = memref.load %arg3[%c22_74] : memref<32xf32, #tpu.memory_space<smem>>
    %371 = vector.broadcast %370 : f32 to vector<8x128xf32>
    %372 = arith.mulf %369, %371 : vector<8x128xf32>
    %373 = arith.addf %357, %372 : vector<8x128xf32>
    %c23 = arith.constant 23 : index
    %374 = memref.load %arg1[%c23] : memref<64xf32, #tpu.memory_space<smem>>
    %375 = vector.broadcast %374 : f32 to vector<8x128xf32>
    %376 = arith.mulf %1, %375 : vector<8x128xf32>
    %c55 = arith.constant 55 : index
    %377 = memref.load %arg1[%c55] : memref<64xf32, #tpu.memory_space<smem>>
    %378 = vector.broadcast %377 : f32 to vector<8x128xf32>
    %379 = arith.mulf %3, %378 : vector<8x128xf32>
    %380 = arith.addf %376, %379 : vector<8x128xf32>
    %c23_75 = arith.constant 23 : index
    %381 = memref.load %arg2[%c23_75] : memref<32xf32, #tpu.memory_space<smem>>
    %382 = vector.broadcast %381 : f32 to vector<8x128xf32>
    %383 = arith.addf %380, %382 : vector<8x128xf32>
    %cst_76 = arith.constant 0.000000e+00 : f32
    %384 = vector.broadcast %cst_76 : f32 to vector<8x128xf32>
    %385 = arith.maximumf %383, %384 : vector<8x128xf32>
    %c23_77 = arith.constant 23 : index
    %386 = memref.load %arg3[%c23_77] : memref<32xf32, #tpu.memory_space<smem>>
    %387 = vector.broadcast %386 : f32 to vector<8x128xf32>
    %388 = arith.mulf %385, %387 : vector<8x128xf32>
    %389 = arith.addf %373, %388 : vector<8x128xf32>
    %c24 = arith.constant 24 : index
    %390 = memref.load %arg1[%c24] : memref<64xf32, #tpu.memory_space<smem>>
    %391 = vector.broadcast %390 : f32 to vector<8x128xf32>
    %392 = arith.mulf %1, %391 : vector<8x128xf32>
    %c56 = arith.constant 56 : index
    %393 = memref.load %arg1[%c56] : memref<64xf32, #tpu.memory_space<smem>>
    %394 = vector.broadcast %393 : f32 to vector<8x128xf32>
    %395 = arith.mulf %3, %394 : vector<8x128xf32>
    %396 = arith.addf %392, %395 : vector<8x128xf32>
    %c24_78 = arith.constant 24 : index
    %397 = memref.load %arg2[%c24_78] : memref<32xf32, #tpu.memory_space<smem>>
    %398 = vector.broadcast %397 : f32 to vector<8x128xf32>
    %399 = arith.addf %396, %398 : vector<8x128xf32>
    %cst_79 = arith.constant 0.000000e+00 : f32
    %400 = vector.broadcast %cst_79 : f32 to vector<8x128xf32>
    %401 = arith.maximumf %399, %400 : vector<8x128xf32>
    %c24_80 = arith.constant 24 : index
    %402 = memref.load %arg3[%c24_80] : memref<32xf32, #tpu.memory_space<smem>>
    %403 = vector.broadcast %402 : f32 to vector<8x128xf32>
    %404 = arith.mulf %401, %403 : vector<8x128xf32>
    %405 = arith.addf %389, %404 : vector<8x128xf32>
    %c25 = arith.constant 25 : index
    %406 = memref.load %arg1[%c25] : memref<64xf32, #tpu.memory_space<smem>>
    %407 = vector.broadcast %406 : f32 to vector<8x128xf32>
    %408 = arith.mulf %1, %407 : vector<8x128xf32>
    %c57 = arith.constant 57 : index
    %409 = memref.load %arg1[%c57] : memref<64xf32, #tpu.memory_space<smem>>
    %410 = vector.broadcast %409 : f32 to vector<8x128xf32>
    %411 = arith.mulf %3, %410 : vector<8x128xf32>
    %412 = arith.addf %408, %411 : vector<8x128xf32>
    %c25_81 = arith.constant 25 : index
    %413 = memref.load %arg2[%c25_81] : memref<32xf32, #tpu.memory_space<smem>>
    %414 = vector.broadcast %413 : f32 to vector<8x128xf32>
    %415 = arith.addf %412, %414 : vector<8x128xf32>
    %cst_82 = arith.constant 0.000000e+00 : f32
    %416 = vector.broadcast %cst_82 : f32 to vector<8x128xf32>
    %417 = arith.maximumf %415, %416 : vector<8x128xf32>
    %c25_83 = arith.constant 25 : index
    %418 = memref.load %arg3[%c25_83] : memref<32xf32, #tpu.memory_space<smem>>
    %419 = vector.broadcast %418 : f32 to vector<8x128xf32>
    %420 = arith.mulf %417, %419 : vector<8x128xf32>
    %421 = arith.addf %405, %420 : vector<8x128xf32>
    %c26 = arith.constant 26 : index
    %422 = memref.load %arg1[%c26] : memref<64xf32, #tpu.memory_space<smem>>
    %423 = vector.broadcast %422 : f32 to vector<8x128xf32>
    %424 = arith.mulf %1, %423 : vector<8x128xf32>
    %c58 = arith.constant 58 : index
    %425 = memref.load %arg1[%c58] : memref<64xf32, #tpu.memory_space<smem>>
    %426 = vector.broadcast %425 : f32 to vector<8x128xf32>
    %427 = arith.mulf %3, %426 : vector<8x128xf32>
    %428 = arith.addf %424, %427 : vector<8x128xf32>
    %c26_84 = arith.constant 26 : index
    %429 = memref.load %arg2[%c26_84] : memref<32xf32, #tpu.memory_space<smem>>
    %430 = vector.broadcast %429 : f32 to vector<8x128xf32>
    %431 = arith.addf %428, %430 : vector<8x128xf32>
    %cst_85 = arith.constant 0.000000e+00 : f32
    %432 = vector.broadcast %cst_85 : f32 to vector<8x128xf32>
    %433 = arith.maximumf %431, %432 : vector<8x128xf32>
    %c26_86 = arith.constant 26 : index
    %434 = memref.load %arg3[%c26_86] : memref<32xf32, #tpu.memory_space<smem>>
    %435 = vector.broadcast %434 : f32 to vector<8x128xf32>
    %436 = arith.mulf %433, %435 : vector<8x128xf32>
    %437 = arith.addf %421, %436 : vector<8x128xf32>
    %c27 = arith.constant 27 : index
    %438 = memref.load %arg1[%c27] : memref<64xf32, #tpu.memory_space<smem>>
    %439 = vector.broadcast %438 : f32 to vector<8x128xf32>
    %440 = arith.mulf %1, %439 : vector<8x128xf32>
    %c59 = arith.constant 59 : index
    %441 = memref.load %arg1[%c59] : memref<64xf32, #tpu.memory_space<smem>>
    %442 = vector.broadcast %441 : f32 to vector<8x128xf32>
    %443 = arith.mulf %3, %442 : vector<8x128xf32>
    %444 = arith.addf %440, %443 : vector<8x128xf32>
    %c27_87 = arith.constant 27 : index
    %445 = memref.load %arg2[%c27_87] : memref<32xf32, #tpu.memory_space<smem>>
    %446 = vector.broadcast %445 : f32 to vector<8x128xf32>
    %447 = arith.addf %444, %446 : vector<8x128xf32>
    %cst_88 = arith.constant 0.000000e+00 : f32
    %448 = vector.broadcast %cst_88 : f32 to vector<8x128xf32>
    %449 = arith.maximumf %447, %448 : vector<8x128xf32>
    %c27_89 = arith.constant 27 : index
    %450 = memref.load %arg3[%c27_89] : memref<32xf32, #tpu.memory_space<smem>>
    %451 = vector.broadcast %450 : f32 to vector<8x128xf32>
    %452 = arith.mulf %449, %451 : vector<8x128xf32>
    %453 = arith.addf %437, %452 : vector<8x128xf32>
    %c28 = arith.constant 28 : index
    %454 = memref.load %arg1[%c28] : memref<64xf32, #tpu.memory_space<smem>>
    %455 = vector.broadcast %454 : f32 to vector<8x128xf32>
    %456 = arith.mulf %1, %455 : vector<8x128xf32>
    %c60 = arith.constant 60 : index
    %457 = memref.load %arg1[%c60] : memref<64xf32, #tpu.memory_space<smem>>
    %458 = vector.broadcast %457 : f32 to vector<8x128xf32>
    %459 = arith.mulf %3, %458 : vector<8x128xf32>
    %460 = arith.addf %456, %459 : vector<8x128xf32>
    %c28_90 = arith.constant 28 : index
    %461 = memref.load %arg2[%c28_90] : memref<32xf32, #tpu.memory_space<smem>>
    %462 = vector.broadcast %461 : f32 to vector<8x128xf32>
    %463 = arith.addf %460, %462 : vector<8x128xf32>
    %cst_91 = arith.constant 0.000000e+00 : f32
    %464 = vector.broadcast %cst_91 : f32 to vector<8x128xf32>
    %465 = arith.maximumf %463, %464 : vector<8x128xf32>
    %c28_92 = arith.constant 28 : index
    %466 = memref.load %arg3[%c28_92] : memref<32xf32, #tpu.memory_space<smem>>
    %467 = vector.broadcast %466 : f32 to vector<8x128xf32>
    %468 = arith.mulf %465, %467 : vector<8x128xf32>
    %469 = arith.addf %453, %468 : vector<8x128xf32>
    %c29 = arith.constant 29 : index
    %470 = memref.load %arg1[%c29] : memref<64xf32, #tpu.memory_space<smem>>
    %471 = vector.broadcast %470 : f32 to vector<8x128xf32>
    %472 = arith.mulf %1, %471 : vector<8x128xf32>
    %c61 = arith.constant 61 : index
    %473 = memref.load %arg1[%c61] : memref<64xf32, #tpu.memory_space<smem>>
    %474 = vector.broadcast %473 : f32 to vector<8x128xf32>
    %475 = arith.mulf %3, %474 : vector<8x128xf32>
    %476 = arith.addf %472, %475 : vector<8x128xf32>
    %c29_93 = arith.constant 29 : index
    %477 = memref.load %arg2[%c29_93] : memref<32xf32, #tpu.memory_space<smem>>
    %478 = vector.broadcast %477 : f32 to vector<8x128xf32>
    %479 = arith.addf %476, %478 : vector<8x128xf32>
    %cst_94 = arith.constant 0.000000e+00 : f32
    %480 = vector.broadcast %cst_94 : f32 to vector<8x128xf32>
    %481 = arith.maximumf %479, %480 : vector<8x128xf32>
    %c29_95 = arith.constant 29 : index
    %482 = memref.load %arg3[%c29_95] : memref<32xf32, #tpu.memory_space<smem>>
    %483 = vector.broadcast %482 : f32 to vector<8x128xf32>
    %484 = arith.mulf %481, %483 : vector<8x128xf32>
    %485 = arith.addf %469, %484 : vector<8x128xf32>
    %c30 = arith.constant 30 : index
    %486 = memref.load %arg1[%c30] : memref<64xf32, #tpu.memory_space<smem>>
    %487 = vector.broadcast %486 : f32 to vector<8x128xf32>
    %488 = arith.mulf %1, %487 : vector<8x128xf32>
    %c62 = arith.constant 62 : index
    %489 = memref.load %arg1[%c62] : memref<64xf32, #tpu.memory_space<smem>>
    %490 = vector.broadcast %489 : f32 to vector<8x128xf32>
    %491 = arith.mulf %3, %490 : vector<8x128xf32>
    %492 = arith.addf %488, %491 : vector<8x128xf32>
    %c30_96 = arith.constant 30 : index
    %493 = memref.load %arg2[%c30_96] : memref<32xf32, #tpu.memory_space<smem>>
    %494 = vector.broadcast %493 : f32 to vector<8x128xf32>
    %495 = arith.addf %492, %494 : vector<8x128xf32>
    %cst_97 = arith.constant 0.000000e+00 : f32
    %496 = vector.broadcast %cst_97 : f32 to vector<8x128xf32>
    %497 = arith.maximumf %495, %496 : vector<8x128xf32>
    %c30_98 = arith.constant 30 : index
    %498 = memref.load %arg3[%c30_98] : memref<32xf32, #tpu.memory_space<smem>>
    %499 = vector.broadcast %498 : f32 to vector<8x128xf32>
    %500 = arith.mulf %497, %499 : vector<8x128xf32>
    %501 = arith.addf %485, %500 : vector<8x128xf32>
    %c31 = arith.constant 31 : index
    %502 = memref.load %arg1[%c31] : memref<64xf32, #tpu.memory_space<smem>>
    %503 = vector.broadcast %502 : f32 to vector<8x128xf32>
    %504 = arith.mulf %1, %503 : vector<8x128xf32>
    %c63 = arith.constant 63 : index
    %505 = memref.load %arg1[%c63] : memref<64xf32, #tpu.memory_space<smem>>
    %506 = vector.broadcast %505 : f32 to vector<8x128xf32>
    %507 = arith.mulf %3, %506 : vector<8x128xf32>
    %508 = arith.addf %504, %507 : vector<8x128xf32>
    %c31_99 = arith.constant 31 : index
    %509 = memref.load %arg2[%c31_99] : memref<32xf32, #tpu.memory_space<smem>>
    %510 = vector.broadcast %509 : f32 to vector<8x128xf32>
    %511 = arith.addf %508, %510 : vector<8x128xf32>
    %cst_100 = arith.constant 0.000000e+00 : f32
    %512 = vector.broadcast %cst_100 : f32 to vector<8x128xf32>
    %513 = arith.maximumf %511, %512 : vector<8x128xf32>
    %c31_101 = arith.constant 31 : index
    %514 = memref.load %arg3[%c31_101] : memref<32xf32, #tpu.memory_space<smem>>
    %515 = vector.broadcast %514 : f32 to vector<8x128xf32>
    %516 = arith.mulf %513, %515 : vector<8x128xf32>
    %517 = arith.addf %501, %516 : vector<8x128xf32>
    %c0_102 = arith.constant 0 : index
    %c0_103 = arith.constant 0 : index
    %518 = vector.load %arg6[%c0_102, %c0_103] : memref<8x128xf32, #tpu.memory_space<vmem>>, vector<8x128xf32>
    tpu.vector_store %arg6[%c0_102, %c0_103], %517 {strides = array<i32>} : memref<8x128xf32, #tpu.memory_space<vmem>>, vector<8x128xf32>,
    return
  }
  func.func @transform_0(%arg0: i32) -> i32 {
    %c0_i32 = arith.constant 0 : i32
    %c0_i32_0 = arith.constant 0 : i32
    return %c0_i32 : i32
  }
  func.func @transform_1(%arg0: i32) -> i32 {
    %c0_i32 = arith.constant 0 : i32
    %c0_i32_0 = arith.constant 0 : i32
    return %c0_i32 : i32
  }
  func.func @transform_2(%arg0: i32) -> i32 {
    %c0_i32 = arith.constant 0 : i32
    %c0_i32_0 = arith.constant 0 : i32
    return %c0_i32 : i32
  }
  func.func @transform_3(%arg0: i32) -> i32 {
    %c0_i32 = arith.constant 0 : i32
    %c0_i32_0 = arith.constant 0 : i32
    return %c0_i32 : i32
  }
  func.func @transform_4(%arg0: i32) -> (i32, i32, i32) {
    %c0_i32 = arith.constant 0 : i32
    %c0_i32_0 = arith.constant 0 : i32
    %c0_i32_1 = arith.constant 0 : i32
    return %c0_i32, %arg0, %c0_i32_0 : i32, i32, i32
  }
  func.func @transform_5(%arg0: i32) -> (i32, i32) {
    %c0_i32 = arith.constant 0 : i32
    %c0_i32_0 = arith.constant 0 : i32
    return %arg0, %c0_i32 : i32, i32
  }
}

</mosaic_0001>

<bundles_post_ra>
// kernel: tpu_custom_call.1
= control target key start
LH: loop header
LB: loop body
LE: loop exit
PB: predicated region body
PF: predicated region fallthrough
CT: control target
= control target key end

     0   :  { %11 = vsyncpa [#allocation6], 0  ;;  %s1305_s0 = inlined_call_operand.vmem [shape: f32[64], index: 0, kind: input, shape index: {}]   ;;  %s1306_s1 = inlined_call_operand.vmem [shape: f32[32], index: 1, kind: input, shape index: {}]   ;;  %s1307_s2 = inlined_call_operand.vmem [shape: f32[32], index: 2, kind: input, shape index: {}]   ;;  %s1308_s3 = inlined_call_operand.<no memory space> [shape: f32[1], index: 3, kind: input, shape index: {}]   ;;  %s1309_s4 = inlined_call_operand.hbm [shape: f32[2,8,128], index: 4, kind: input, shape index: {}]   ;;  %s1310_s5 = inlined_call_operand.hbm [shape: f32[8,128], index: 5, kind: output, shape index: {}]  }
   0x1   :  { %12 = vsyncpa [#allocation8], 0 }
   0x2   :  { %13 = vsyncpa [#allocation4], 0  ;;  %s31_s20 = sshll.u32 %s1306_s1, 4  ;;  %s32_s20 = int_to_ptr.vmem [resolvable:$true] %s31_s20 }
   0x3   :  { %14 = vsyncpa [#allocation5], 0  ;;  %s21_s23 = sshll.u32 %s1305_s0, 4  ;;  %s707_s24 = scalar_lea.vmem %s32_s20, 16  ;;  %s22_s23 = int_to_ptr.vmem [resolvable:$true] %s21_s23 }
   0x4   :  { %p708_p0 = scmp.ne.s32.totalorder %s32_s20, %s707_s24  ;;  %p712_p1 = scmp.lt.s32.totalorder %s32_s20, %s32_s20 }
   0x5   :  { %p713_p2 = scmp.lt.s32.totalorder %s707_s24, %s707_s24 }
   0x7   :  { %p714_p3 = por %p713_p2, %p712_p1 }
   0x9   :  { %p715_p4 = pnand %p714_p3, %p708_p0 }
   0xb   :  { %718 = shalt.err (!%p715_p4)
}
   0xc   :  { %s795_s25 = smov [#allocation7]   ;;  %s719_s26 = scalar_lea.vmem %s22_s23, 16 }
   0xd   :  { %34 = dma.vmem_to_smem %s32_s20, 16, %s795_s25, [#allocation8]  }
   0xe   :  { %p720_p5 = scmp.ne.s32.totalorder %s22_s23, %s719_s26  ;;  %p724_p6 = scmp.lt.s32.totalorder %s22_s23, %s22_s23 }
   0xf   :  { %p725_p7 = scmp.lt.s32.totalorder %s719_s26, %s719_s26 }
  0x11   :  { %p726_p8 = por %p725_p7, %p724_p6 }
  0x13   :  { %p727_p9 = pnand %p726_p8, %p720_p5 }
  0x15   :  { %730 = shalt.err (!%p727_p9)
}
  0x16   :  { %s796_s1 = smov [#allocation3]   ;;  %s41_s28 = sshll.u32 %s1307_s2, 4  ;;  %s42_s28 = int_to_ptr.vmem [resolvable:$true] %s41_s28 }
  0x17   :  { %24 = dma.vmem_to_smem %s22_s23, 16, %s796_s1, [#allocation6]  }
  0x18   :  { %s731_s29 = scalar_lea.vmem %s42_s28, 16  ;;  %p736_p11 = scmp.lt.s32.totalorder %s42_s28, %s42_s28 }
  0x19   :  { %p732_p10 = scmp.ne.s32.totalorder %s42_s28, %s731_s29  ;;  %p737_p12 = scmp.lt.s32.totalorder %s731_s29, %s731_s29 }
  0x1b   :  { %p738_p13 = por %p737_p12, %p736_p11 }
  0x1d   :  { %p739_p0 = pnand %p738_p13, %p732_p10 }
  0x1f   :  { %742 = shalt.err (!%p739_p0)
}
  0x20   :  { %s797_s30 = smov [#allocation9]   ;;  %s798_s6 = smov [#allocation10]  }
  0x21   :  { %44 = dma.vmem_to_smem %s42_s28, 16, %s797_s30, [#allocation8]  }
  0x22   :  { %s52_s7 = sshll.u32 %s798_s6, 4  ;;  %s743_s10 = scalar_lea.hbm %s1309_s4, 256  ;;  %s53_s7 = int_to_ptr.vmem [resolvable:$true] %s52_s7 }
  0x23   :  { %p744_p1 = scmp.ne.s32.totalorder %s1309_s4, %s743_s10  ;;  %p747_p2 = scmp.lt.u32.totalorder %s743_s10, %s1309_s4 }
  0x25   :  { %p749_p3 = pnand %p747_p2, %p744_p1 }
  0x27   :  { %752 = shalt.err (!%p749_p3)
}
  0x28   :  { %s753_s14 = scalar_lea.vmem %s53_s7, 256  ;;  %p758_p5 = scmp.lt.s32.totalorder %s53_s7, %s53_s7 }
  0x29   :  { %p754_p4 = scmp.ne.s32.totalorder %s53_s7, %s753_s14  ;;  %p759_p6 = scmp.lt.s32.totalorder %s753_s14, %s753_s14 }
  0x2b   :  { %p760_p7 = por %p759_p6, %p758_p5 }
  0x2d   :  { %p761_p8 = pnand %p760_p7, %p754_p4 }
  0x2f   :  { %764 = shalt.err (!%p761_p8)
}
  0x30   :  { %s799_s15 = smov 128   ;;  %s800_s16 = smov 8  }
  0x31   :  { %58 = dma.hbm_to_vmem [thread:$0]  %s1309_s4, 256, %s53_s7, [#allocation4], %s799_s15, %s799_s15, %s800_s16  }
  0x32   :  { %787 = dma.done.wait [#allocation6], 16  }
  0x33   :  { %788 = vsyncadd [#allocation6], 4294967280 }
  0x34   :  { %789 = dma.done.wait [#allocation8], 32  }
  0x35   :  { %790 = vsyncadd [#allocation8], 4294967264 }
  0x36   :  { %791 = dma.done.wait [#allocation4], 256  }
  0x37   :  { %792 = vsyncadd [#allocation4], 4294967040 }
  0x38   :  { %71 = sfence }
  0x39   :  { %s77_s19 = sld [smem:[#allocation3]]  ;;  %s576_s23 = sld [smem:[#allocation3 + $0x1]]  ;;  %v861_v0 = vld [vmem:[#allocation10] sm:$0xff]  ;;  %v863_v1 = vld [vmem:[#allocation10 + $0x8] sm:$0xff]  ;;  %v76_v9 = vstv %s1308_s3 }
  0x3a   :  { %s575_s20 = sld [smem:[#allocation3 + $0x20]]  ;;  %s577_s24 = sld [smem:[#allocation3 + $0x21]] }
  0x3b   :  { %s853_s21 = sld [smem:[#allocation7]]  ;;  %s857_s25 = sld [smem:[#allocation7 + $0x1]] }
  0x3c   :  { %s855_s22 = sld [smem:[#allocation9]]  ;;  %s859_s26 = sld [smem:[#allocation9 + $0x1]] }
  0x3d   :  { %s865_s4 = sld [smem:[#allocation3 + $0x2]]  ;;  %s873_s28 = sld [smem:[#allocation3 + $0x3]] }
  0x3e   :  { %s867_s1 = sld [smem:[#allocation3 + $0x22]]  ;;  %s875_s29 = sld [smem:[#allocation3 + $0x23]] }
  0x3f   :  { %s869_s0 = sld [smem:[#allocation7 + $0x2]]  ;;  %v78_v2 = vstv %s77_s19  ;;  %s879_s30 = sld [smem:[#allocation7 + $0x3]]  ;;  %v93_v7 = vstv %s576_s23 }
  0x40   :  { %s871_s27 = sld [smem:[#allocation9 + $0x2]]  ;;  %v81_v3 = vstv %s575_s20  ;;  %v79_v4 = vmul.f32 %v78_v2, %v861_v0  ;;  %s881_s6 = sld [smem:[#allocation9 + $0x3]]  ;;  %v96_v8 = vstv %s577_s24  ;;  %v94_v11 = vmul.f32 %v93_v7, %v861_v0 }
  0x41   :  { %v82_v5 = vmul.f32 %v81_v3, %v863_v1  ;;  %v85_v6 = vstv %s853_s21  ;;  %s884_s7 = sld [smem:[#allocation3 + $0x4]]  ;;  %v97_v12 = vmul.f32 %v96_v8, %v863_v1  ;;  %v100_v14 = vstv %s857_s25  ;;  %s901_s2 = sld [smem:[#allocation3 + $0x5]] }
  0x42   :  { %s886_s8 = sld [smem:[#allocation3 + $0x24]]  ;;  %v89_v13 = vstv %s855_s22  ;;  %s903_s3 = sld [smem:[#allocation3 + $0x25]]  ;;  %v104_v21 = vstv %s859_s26 }
  0x43   :  { %v83_v10 = vadd.f32 %v82_v5, %v79_v4  ;;  %s893_s11 = sld [smem:[#allocation7 + $0x4]]  ;;  %v108_v15 = vstv %s865_s4  ;;  %v98_v18 = vadd.f32 %v97_v12, %v94_v11  ;;  %v123_v23 = vstv %s873_s28  ;;  %s911_s13 = sld [smem:[#allocation7 + $0x5]] }
  0x44   :  { %s895_s12 = sld [smem:[#allocation9 + $0x4]]  ;;  %v111_v16 = vstv %s867_s1  ;;  %v109_v19 = vmul.f32 %v108_v15, %v861_v0  ;;  %v126_v24 = vstv %s875_s29  ;;  %s913_s14 = sld [smem:[#allocation3 + $0x6]]  ;;  %v124_v28 = vmul.f32 %v123_v23, %v861_v0 }
  0x45   :  { %v86_v17 = vadd.f32 %v85_v6, %v83_v10  ;;  %v112_v20 = vmul.f32 %v111_v16, %v863_v1  ;;  %v115_v22 = vstv %s869_s0  ;;  %v101_v26 = vadd.f32 %v100_v14, %v98_v18  ;;  %s916_s15 = sld [smem:[#allocation3 + $0x26]]  ;;  %s922_s16 = sld [smem:[#allocation9 + $0x5]] }
  0x46   :  { %v119_v29 = vstv %s871_s27  ;;  %v127_v30 = vmul.f32 %v126_v24, %v863_v1  ;;  %v130_v31 = vstv %s879_s30  ;;  %s924_s17 = sld [smem:[#allocation7 + $0x6]]  ;;  %s927_s18 = sld [smem:[#allocation3 + $0x7]]  ;;  %v134_v38 = vstv %s881_s6 }
  0x47   :  { %v87_v25 = vmax.f32 %v86_v17, 0.0  ;;  %v113_v27 = vadd.f32 %v112_v20, %v109_v19  ;;  %v138_v32 = vstv %s884_s7  ;;  %v102_v34 = vmax.f32 %v101_v26, 0.0  ;;  %s929_s19 = sld [smem:[#allocation3 + $0x27]]  ;;  %s935_s20 = sld [smem:[#allocation9 + $0x6]] }
  0x48   :  { %v139_v36 = vmul.f32 %v138_v32, %v861_v0  ;;  %v128_v37 = vadd.f32 %v127_v30, %v124_v28  ;;  %v141_v39 = vstv %s886_s8  ;;  %s937_s21 = sld [smem:[#allocation7 + $0x7]]  ;;  %v153_v47 = vstv %s901_s2  ;;  %s942_s22 = sld [smem:[#allocation3 + $0x8]] }
  0x49   :  { %v90_v33 = vmul.f32 %v89_v13, %v87_v25  ;;  %v116_v35 = vadd.f32 %v115_v22, %v113_v27  ;;  %v145_v40 = vstv %s893_s11  ;;  %v105_v42 = vmul.f32 %v104_v21, %v102_v34  ;;  %s944_s23 = sld [smem:[#allocation3 + $0x28]]  ;;  %s950_s24 = sld [smem:[#allocation9 + $0x7]] }
  0x4a   :  { %v142_v44 = vmul.f32 %v141_v39, %v863_v1  ;;  %v131_v45 = vadd.f32 %v130_v31, %v128_v37  ;;  %v149_v46 = vstv %s895_s12  ;;  %v156_v48 = vstv %s903_s3  ;;  %s952_s25 = sld [smem:[#allocation7 + $0x8]]  ;;  %s956_s26 = sld [smem:[#allocation3 + $0x9]] }
  0x4b   :  { %v91_v41 = vadd.f32 %v90_v33, %v76_v9  ;;  %v117_v43 = vmax.f32 %v116_v35, 0.0  ;;  %v154_v52 = vmul.f32 %v153_v47, %v861_v0  ;;  %v157_v54 = vmul.f32 %v156_v48, %v863_v1  ;;  %s958_s4 = sld [smem:[#allocation3 + $0x29]]  ;;  %s965_s1 = sld [smem:[#allocation9 + $0x8]] }
  0x4c   :  { %v143_v51 = vadd.f32 %v142_v44, %v139_v36  ;;  %v132_v53 = vmax.f32 %v131_v45, 0.0  ;;  %v160_v55 = vstv %s911_s13  ;;  %v168_v56 = vstv %s913_s14  ;;  %s967_s0 = sld [smem:[#allocation7 + $0x9]]  ;;  %s970_s27 = sld [smem:[#allocation3 + $0xa]] }
  0x4d   :  { %v106_v49 = vadd.f32 %v105_v42, %v91_v41  ;;  %v120_v50 = vmul.f32 %v119_v29, %v117_v43  ;;  %v169_v59 = vmul.f32 %v168_v56, %v861_v0  ;;  %v171_v60 = vstv %s916_s15  ;;  %s972_s28 = sld [smem:[#allocation3 + $0x2a]]  ;;  %s977_s29 = sld [smem:[#allocation9 + $0x9]] }
  0x4e   :  { %v146_v58 = vadd.f32 %v145_v40, %v143_v51  ;;  %v135_v61 = vmul.f32 %v134_v38, %v132_v53  ;;  %v158_v62 = vadd.f32 %v157_v54, %v154_v52  ;;  %v164_v63 = vstv %s922_s16  ;;  %s981_s30 = sld [smem:[#allocation7 + $0xa]]  ;;  %s983_s6 = sld [smem:[#allocation3 + $0xb]] }
  0x4f   :  { %v121_v57 = vadd.f32 %v120_v50, %v106_v49  ;;  %v172_v2 = vmul.f32 %v171_v60, %v863_v1  ;;  %v175_v4 = vstv %s924_s17  ;;  %v183_v5 = vstv %s927_s18  ;;  %s987_s7 = sld [smem:[#allocation9 + $0xa]]  ;;  %s991_s8 = sld [smem:[#allocation3 + $0x2b]] }
  0x50   :  { %v147_v3 = vmax.f32 %v146_v58, 0.0  ;;  %v186_v6 = vstv %s929_s19  ;;  %v161_v8 = vadd.f32 %v160_v55, %v158_v62  ;;  %v184_v10 = vmul.f32 %v183_v5, %v861_v0  ;;  %s993_s9 = sld [smem:[#allocation7 + $0xb]]  ;;  %s997_s10 = sld [smem:[#allocation3 + $0xc]] }
  0x51   :  { %v136_v7 = vadd.f32 %v135_v61, %v121_v57  ;;  %v173_v9 = vadd.f32 %v172_v2, %v169_v59  ;;  %v179_v12 = vstv %s935_s20  ;;  %v187_v13 = vmul.f32 %v186_v6, %v863_v1  ;;  %s1001_s11 = sld [smem:[#allocation9 + $0xb]]  ;;  %s1003_s12 = sld [smem:[#allocation3 + $0x2c]] }
  0x52   :  { %v150_v11 = vmul.f32 %v149_v46, %v147_v3  ;;  %v190_v14 = vstv %s937_s21  ;;  %v162_v15 = vmax.f32 %v161_v8, 0.0  ;;  %v198_v17 = vstv %s942_s22  ;;  %s1007_s2 = sld [smem:[#allocation7 + $0xc]]  ;;  %s1013_s13 = sld [smem:[#allocation3 + $0xd]] }
  0x53   :  { %v176_v16 = vadd.f32 %v175_v4, %v173_v9  ;;  %v201_v18 = vstv %s944_s23  ;;  %v188_v20 = vadd.f32 %v187_v13, %v184_v10  ;;  %v199_v21 = vmul.f32 %v198_v17, %v861_v0  ;;  %s1009_s3 = sld [smem:[#allocation9 + $0xc]]  ;;  %s1015_s14 = sld [smem:[#allocation3 + $0x2d]] }
  0x54   :  { %v151_v19 = vadd.f32 %v150_v11, %v136_v7  ;;  %v202_v22 = vmul.f32 %v201_v18, %v863_v1  ;;  %v165_v23 = vmul.f32 %v164_v63, %v162_v15  ;;  %v194_v25 = vstv %s950_s24  ;;  %s1019_s15 = sld [smem:[#allocation7 + $0xd]]  ;;  %s1024_s16 = sld [smem:[#allocation3 + $0xe]] }
  0x55   :  { %v177_v24 = vmax.f32 %v176_v16, 0.0  ;;  %v205_v26 = vstv %s952_s25  ;;  %v191_v27 = vadd.f32 %v190_v14, %v188_v20  ;;  %v213_v29 = vstv %s956_s26  ;;  %s1026_s17 = sld [smem:[#allocation3 + $0x2e]]  ;;  %s1032_s18 = sld [smem:[#allocation9 + $0xd]] }
  0x56   :  { %v203_v28 = vadd.f32 %v202_v22, %v199_v21  ;;  %v216_v30 = vstv %s958_s4  ;;  %v166_v31 = vadd.f32 %v165_v23, %v151_v19  ;;  %v214_v33 = vmul.f32 %v213_v29, %v861_v0  ;;  %s1034_s19 = sld [smem:[#allocation7 + $0xe]]  ;;  %s1038_s20 = sld [smem:[#allocation3 + $0xf]] }
  0x57   :  { %v180_v32 = vmul.f32 %v179_v12, %v177_v24  ;;  %v217_v34 = vmul.f32 %v216_v30, %v863_v1  ;;  %v192_v35 = vmax.f32 %v191_v27, 0.0  ;;  %v209_v37 = vstv %s965_s1  ;;  %s1040_s21 = sld [smem:[#allocation3 + $0x2f]]  ;;  %s1047_s22 = sld [smem:[#allocation9 + $0xe]] }
  0x58   :  { %v206_v36 = vadd.f32 %v205_v26, %v203_v28  ;;  %v220_v38 = vstv %s967_s0  ;;  %v228_v41 = vstv %s970_s27  ;;  %v231_v42 = vstv %s972_s28  ;;  %s1049_s23 = sld [smem:[#allocation7 + $0xf]]  ;;  %s1054_s24 = sld [smem:[#allocation3 + $0x10]] }
  0x59   :  { %v181_v39 = vadd.f32 %v180_v32, %v166_v31  ;;  %v218_v40 = vadd.f32 %v217_v34, %v214_v33  ;;  %v195_v43 = vmul.f32 %v194_v25, %v192_v35  ;;  %v229_v45 = vmul.f32 %v228_v41, %v861_v0  ;;  %s1057_s25 = sld [smem:[#allocation9 + $0xf]]  ;;  %s1059_s26 = sld [smem:[#allocation3 + $0x30]] }
  0x5a   :  { %v207_v44 = vmax.f32 %v206_v36, 0.0  ;;  %v232_v46 = vmul.f32 %v231_v42, %v863_v1  ;;  %v224_v48 = vstv %s977_s29  ;;  %v235_v49 = vstv %s981_s30  ;;  %s1065_s4 = sld [smem:[#allocation7 + $0x10]]  ;;  %s1070_s0 = sld [smem:[#allocation3 + $0x11]] }
  0x5b   :  { %v221_v47 = vadd.f32 %v220_v38, %v218_v40  ;;  %v243_v50 = vstv %s983_s6  ;;  %v196_v51 = vadd.f32 %v195_v43, %v181_v39  ;;  %v239_v56 = vstv %s987_s7  ;;  %s1067_s1 = sld [smem:[#allocation9 + $0x10]]  ;;  %s1072_s27 = sld [smem:[#allocation3 + $0x31]] }
  0x5c   :  { %v210_v52 = vmul.f32 %v209_v37, %v207_v44  ;;  %v233_v53 = vadd.f32 %v232_v46, %v229_v45  ;;  %v244_v54 = vmul.f32 %v243_v50, %v861_v0  ;;  %v246_v57 = vstv %s991_s8  ;;  %s1079_s28 = sld [smem:[#allocation7 + $0x11]]  ;;  %s1081_s29 = sld [smem:[#allocation3 + $0x12]] }
  0x5d   :  { %v222_v55 = vmax.f32 %v221_v47, 0.0  ;;  %v250_v58 = vstv %s993_s9  ;;  %v247_v61 = vmul.f32 %v246_v57, %v863_v1  ;;  %v258_v62 = vstv %s997_s10  ;;  %s1085_s30 = sld [smem:[#allocation9 + $0x11]]  ;;  %s1089_s6 = sld [smem:[#allocation3 + $0x32]] }
  0x5e   :  { %v211_v59 = vadd.f32 %v210_v52, %v196_v51  ;;  %v236_v60 = vadd.f32 %v235_v49, %v233_v53  ;;  %v254_v2 = vstv %s1001_s11  ;;  %v259_v3 = vmul.f32 %v258_v62, %v861_v0  ;;  %s1091_s7 = sld [smem:[#allocation7 + $0x12]]  ;;  %s1094_s8 = sld [smem:[#allocation3 + $0x13]] }
  0x5f   :  { %v225_v63 = vmul.f32 %v224_v48, %v222_v55  ;;  %v261_v4 = vstv %s1003_s12  ;;  %v248_v6 = vadd.f32 %v247_v61, %v244_v54  ;;  %v265_v8 = vstv %s1007_s2  ;;  %s1099_s9 = sld [smem:[#allocation9 + $0x12]]  ;;  %s1101_s10 = sld [smem:[#allocation3 + $0x33]] }
  0x60   :  { %v237_v5 = vmax.f32 %v236_v60, 0.0  ;;  %v262_v7 = vmul.f32 %v261_v4, %v863_v1  ;;  %v269_v10 = vstv %s1009_s3  ;;  %v273_v11 = vstv %s1013_s13  ;;  %s1104_s11 = sld [smem:[#allocation7 + $0x13]]  ;;  %s1112_s2 = sld [smem:[#allocation3 + $0x14]] }
  0x61   :  { %v226_v9 = vadd.f32 %v225_v63, %v211_v59  ;;  %v276_v12 = vstv %s1015_s14  ;;  %v251_v14 = vadd.f32 %v250_v58, %v248_v6  ;;  %v274_v16 = vmul.f32 %v273_v11, %v861_v0  ;;  %s1106_s12 = sld [smem:[#allocation9 + $0x13]]  ;;  %s1114_s3 = sld [smem:[#allocation3 + $0x34]] }
  0x62   :  { %v240_v13 = vmul.f32 %v239_v56, %v237_v5  ;;  %v263_v15 = vadd.f32 %v262_v7, %v259_v3  ;;  %v277_v17 = vmul.f32 %v276_v12, %v863_v1  ;;  %v280_v18 = vstv %s1019_s15  ;;  %s1120_s13 = sld [smem:[#allocation7 + $0x14]]  ;;  %s1122_s14 = sld [smem:[#allocation3 + $0x15]] }
  0x63   :  { %v288_v19 = vstv %s1024_s16  ;;  %v291_v20 = vstv %s1026_s17  ;;  %v252_v22 = vmax.f32 %v251_v14, 0.0  ;;  %v284_v26 = vstv %s1032_s18  ;;  %s1125_s15 = sld [smem:[#allocation3 + $0x35]]  ;;  %s1130_s16 = sld [smem:[#allocation9 + $0x14]] }
  0x64   :  { %v241_v21 = vadd.f32 %v240_v13, %v226_v9  ;;  %v266_v23 = vadd.f32 %v265_v8, %v263_v15  ;;  %v289_v24 = vmul.f32 %v288_v19, %v861_v0  ;;  %v278_v25 = vadd.f32 %v277_v17, %v274_v16  ;;  %s1134_s17 = sld [smem:[#allocation7 + $0x15]]  ;;  %s1136_s18 = sld [smem:[#allocation3 + $0x16]] }
  0x65   :  { %v292_v27 = vmul.f32 %v291_v20, %v863_v1  ;;  %v295_v28 = vstv %s1034_s19  ;;  %v255_v29 = vmul.f32 %v254_v2, %v252_v22  ;;  %v303_v31 = vstv %s1038_s20  ;;  %s1141_s19 = sld [smem:[#allocation3 + $0x36]]  ;;  %s1145_s20 = sld [smem:[#allocation9 + $0x15]] }
  0x66   :  { %v267_v30 = vmax.f32 %v266_v23, 0.0  ;;  %v306_v32 = vstv %s1040_s21  ;;  %v281_v33 = vadd.f32 %v280_v18, %v278_v25  ;;  %v304_v35 = vmul.f32 %v303_v31, %v861_v0  ;;  %s1150_s21 = sld [smem:[#allocation7 + $0x16]] }
  0x67   :  { %v293_v34 = vadd.f32 %v292_v27, %v289_v24  ;;  %v307_v36 = vmul.f32 %v306_v32, %v863_v1  ;;  %v256_v37 = vadd.f32 %v255_v29, %v241_v21  ;;  %v299_v39 = vstv %s1047_s22  ;;  %s1152_s22 = sld [smem:[#allocation3 + $0x17]] }
  0x68   :  { %v270_v38 = vmul.f32 %v269_v10, %v267_v30  ;;  %v310_v40 = vstv %s1049_s23  ;;  %v282_v41 = vmax.f32 %v281_v33, 0.0  ;;  %v318_v44 = vstv %s1054_s24  ;;  %s1155_s23 = sld [smem:[#allocation3 + $0x37]]  ;;  %s1160_s24 = sld [smem:[#allocation9 + $0x16]] }
  0x69   :  { %v296_v42 = vadd.f32 %v295_v28, %v293_v34  ;;  %v308_v43 = vadd.f32 %v307_v36, %v304_v35  ;;  %v314_v46 = vstv %s1057_s25  ;;  %v319_v47 = vmul.f32 %v318_v44, %v861_v0  ;;  %s1162_s25 = sld [smem:[#allocation7 + $0x17]] }
  0x6a   :  { %v271_v45 = vadd.f32 %v270_v38, %v256_v37  ;;  %v321_v48 = vstv %s1059_s26  ;;  %v285_v49 = vmul.f32 %v284_v26, %v282_v41  ;;  %v325_v53 = vstv %s1065_s4  ;;  %s1166_s26 = sld [smem:[#allocation3 + $0x18]] }
  0x6b   :  { %v297_v50 = vmax.f32 %v296_v42, 0.0  ;;  %v311_v51 = vadd.f32 %v310_v40, %v308_v43  ;;  %v322_v52 = vmul.f32 %v321_v48, %v863_v1  ;;  %v329_v54 = vstv %s1067_s1  ;;  %s1168_s4 = sld [smem:[#allocation3 + $0x38]]  ;;  %s1174_s1 = sld [smem:[#allocation9 + $0x17]] }
  0x6c   :  { %v333_v55 = vstv %s1070_s0  ;;  %v336_v56 = vstv %s1072_s27  ;;  %v286_v57 = vadd.f32 %v285_v49, %v271_v45  ;;  %v340_v63 = vstv %s1079_s28  ;;  %s1176_s0 = sld [smem:[#allocation7 + $0x18]]  ;;  %s1180_s27 = sld [smem:[#allocation3 + $0x19]] }
  0x6d   :  { %v300_v58 = vmul.f32 %v299_v39, %v297_v50  ;;  %v312_v59 = vmax.f32 %v311_v51, 0.0  ;;  %v323_v60 = vadd.f32 %v322_v52, %v319_v47  ;;  %v334_v61 = vmul.f32 %v333_v55, %v861_v0  ;;  %s1182_s28 = sld [smem:[#allocation3 + $0x39]] }
  0x6e   :  { %v337_v62 = vmul.f32 %v336_v56, %v863_v1  ;;  %v348_v2 = vstv %s1081_s29  ;;  %v344_v8 = vstv %s1085_s30  ;;  %v351_v9 = vstv %s1089_s6  ;;  %s1188_s29 = sld [smem:[#allocation7 + $0x19]]  ;;  %s1190_s30 = sld [smem:[#allocation3 + $0x1a]] }
  0x6f   :  { %v301_v3 = vadd.f32 %v300_v58, %v286_v57  ;;  %v315_v4 = vmul.f32 %v314_v46, %v312_v59  ;;  %v326_v5 = vadd.f32 %v325_v53, %v323_v60  ;;  %v349_v6 = vmul.f32 %v348_v2, %v861_v0  ;;  %s1194_s6 = sld [smem:[#allocation9 + $0x18]] }
  0x70   :  { %v338_v7 = vadd.f32 %v337_v62, %v334_v61  ;;  %v355_v10 = vstv %s1091_s7  ;;  %v352_v13 = vmul.f32 %v351_v9, %v863_v1  ;;  %v363_v14 = vstv %s1094_s8  ;;  %s1198_s7 = sld [smem:[#allocation9 + $0x19]]  ;;  %s1200_s8 = sld [smem:[#allocation3 + $0x3a]] }
  0x71   :  { %v316_v11 = vadd.f32 %v315_v4, %v301_v3  ;;  %v327_v12 = vmax.f32 %v326_v5, 0.0  ;;  %v359_v16 = vstv %s1099_s9  ;;  %v364_v17 = vmul.f32 %v363_v14, %v861_v0  ;;  %s1205_s9 = sld [smem:[#allocation3 + $0x1b]] }
  0x72   :  { %v341_v15 = vadd.f32 %v340_v63, %v338_v7  ;;  %v366_v18 = vstv %s1101_s10  ;;  %v353_v20 = vadd.f32 %v352_v13, %v349_v6  ;;  %v370_v22 = vstv %s1104_s11  ;;  %s1208_s10 = sld [smem:[#allocation7 + $0x1a]]  ;;  %s1210_s11 = sld [smem:[#allocation3 + $0x3b]] }
  0x73   :  { %v330_v19 = vmul.f32 %v329_v54, %v327_v12  ;;  %v367_v21 = vmul.f32 %v366_v18, %v863_v1  ;;  %v374_v24 = vstv %s1106_s12  ;;  %v378_v25 = vstv %s1112_s2  ;;  %s1215_s12 = sld [smem:[#allocation9 + $0x1a]]  ;;  %s1217_s2 = sld [smem:[#allocation7 + $0x1b]] }
  0x74   :  { %v342_v23 = vmax.f32 %v341_v15, 0.0  ;;  %v381_v26 = vstv %s1114_s3  ;;  %v356_v28 = vadd.f32 %v355_v10, %v353_v20  ;;  %v379_v30 = vmul.f32 %v378_v25, %v861_v0  ;;  %s1221_s3 = sld [smem:[#allocation3 + $0x1c]] }
  0x75   :  { %v331_v27 = vadd.f32 %v330_v19, %v316_v11  ;;  %v368_v29 = vadd.f32 %v367_v21, %v364_v17  ;;  %v382_v32 = vmul.f32 %v381_v26, %v863_v1  ;;  %v385_v33 = vstv %s1120_s13  ;;  %s1223_s13 = sld [smem:[#allocation3 + $0x3c]] }
  0x76   :  { %v345_v31 = vmul.f32 %v344_v8, %v342_v23  ;;  %v393_v34 = vstv %s1122_s14  ;;  %v357_v35 = vmax.f32 %v356_v28, 0.0  ;;  %v396_v38 = vstv %s1125_s15  ;;  %s1229_s14 = sld [smem:[#allocation7 + $0x1c]]  ;;  %s1231_s15 = sld [smem:[#allocation3 + $0x1d]] }
  0x77   :  { %v371_v36 = vadd.f32 %v370_v22, %v368_v29  ;;  %v394_v37 = vmul.f32 %v393_v34, %v861_v0  ;;  %v383_v40 = vadd.f32 %v382_v32, %v379_v30  ;;  %v389_v41 = vstv %s1130_s16  ;;  %s1234_s16 = sld [smem:[#allocation9 + $0x1b]] }
  0x78   :  { %v346_v39 = vadd.f32 %v345_v31, %v331_v27  ;;  %v397_v42 = vmul.f32 %v396_v38, %v863_v1  ;;  %v360_v43 = vmul.f32 %v359_v16, %v357_v35  ;;  %v400_v45 = vstv %s1134_s17  ;;  %s1239_s17 = sld [smem:[#allocation9 + $0x1c]] }
  0x79   :  { %v372_v44 = vmax.f32 %v371_v36, 0.0  ;;  %v408_v46 = vstv %s1136_s18  ;;  %v386_v47 = vadd.f32 %v385_v33, %v383_v40  ;;  %v411_v50 = vstv %s1141_s19  ;;  %s1241_s18 = sld [smem:[#allocation3 + $0x3d]]  ;;  %s1245_s19 = sld [smem:[#allocation3 + $0x1e]] }
  0x7a   :  { %v398_v48 = vadd.f32 %v397_v42, %v394_v37  ;;  %v409_v49 = vmul.f32 %v408_v46, %v861_v0  ;;  %v361_v51 = vadd.f32 %v360_v43, %v346_v39  ;;  %v404_v53 = vstv %s1145_s20  ;;  %s1250_s20 = sld [smem:[#allocation7 + $0x1d]] }
  0x7b   :  { %v375_v52 = vmul.f32 %v374_v24, %v372_v44  ;;  %v412_v54 = vmul.f32 %v411_v50, %v863_v1  ;;  %v387_v55 = vmax.f32 %v386_v47, 0.0  ;;  %v415_v57 = vstv %s1150_s21  ;;  %s1252_s21 = sld [smem:[#allocation3 + $0x3e]] }
  0x7c   :  { %v401_v56 = vadd.f32 %v400_v45, %v398_v48  ;;  %v423_v58 = vstv %s1152_s22  ;;  %v426_v62 = vstv %s1155_s23  ;;  %v419_v3 = vstv %s1160_s24  ;;  %s1255_s22 = sld [smem:[#allocation7 + $0x1e]]  ;;  %s1261_s23 = sld [smem:[#allocation3 + $0x1f]] }
  0x7d   :  { %v376_v59 = vadd.f32 %v375_v52, %v361_v51  ;;  %v413_v60 = vadd.f32 %v412_v54, %v409_v49  ;;  %v424_v61 = vmul.f32 %v423_v58, %v861_v0  ;;  %v390_v63 = vmul.f32 %v389_v41, %v387_v55  ;;  %s1263_s24 = sld [smem:[#allocation3 + $0x3f]] }
  0x7e   :  { %v402_v2 = vmax.f32 %v401_v56, 0.0  ;;  %v427_v4 = vmul.f32 %v426_v62, %v863_v1  ;;  %v430_v6 = vstv %s1162_s25  ;;  %v438_v7 = vstv %s1166_s26  ;;  %s1269_s25 = sld [smem:[#allocation9 + $0x1d]]  ;;  %s1272_s26 = sld [smem:[#allocation7 + $0x1f]] }
  0x7f   :  { %v416_v5 = vadd.f32 %v415_v57, %v413_v60  ;;  %v441_v8 = vstv %s1168_s4  ;;  %v391_v9 = vadd.f32 %v390_v63, %v376_v59  ;;  %v439_v12 = vmul.f32 %v438_v7, %v861_v0  ;;  %s1277_s4 = sld [smem:[#allocation9 + $0x1e]] }
  0x80   :  { %v405_v10 = vmul.f32 %v404_v53, %v402_v2  ;;  %v428_v11 = vadd.f32 %v427_v4, %v424_v61  ;;  %v434_v14 = vstv %s1174_s1  ;;  %v442_v15 = vmul.f32 %v441_v8, %v863_v1  ;;  %s699_s1 = sld [smem:[#allocation9 + $0x1f]] }
  0x81   :  { %v417_v13 = vmax.f32 %v416_v5, 0.0  ;;  %v445_v16 = vstv %s1176_s0  ;;  %v453_v19 = vstv %s1180_s27  ;;  %v456_v20 = vstv %s1182_s28  ;;  %s801_s0 = smov [#allocation11]  }
  0x82   :  { %v406_v17 = vadd.f32 %v405_v10, %v391_v9  ;;  %v431_v18 = vadd.f32 %v430_v6, %v428_v11  ;;  %v443_v22 = vadd.f32 %v442_v15, %v439_v12  ;;  %v454_v23 = vmul.f32 %v453_v19, %v861_v0  ;;  %s564_s27 = sshll.u32 %s801_s0, 4  ;;  %s565_s27 = int_to_ptr.vmem [resolvable:$true] %s564_s27 }
  0x83   :  { %v420_v21 = vmul.f32 %v419_v3, %v417_v13  ;;  %v457_v24 = vmul.f32 %v456_v20, %v863_v1  ;;  %v460_v26 = vstv %s1188_s29  ;;  %v468_v27 = vstv %s1190_s30  ;;  %s765_s28 = scalar_lea.vmem %s565_s27, 128  ;;  %p770_p10 = scmp.lt.s32.totalorder %s565_s27, %s565_s27 }
  0x84   :  { %v432_v25 = vmax.f32 %v431_v18, 0.0  ;;  %v446_v29 = vadd.f32 %v445_v16, %v443_v22  ;;  %v469_v31 = vmul.f32 %v468_v27, %v861_v0  ;;  %v449_v33 = vstv %s1194_s6  ;;  %p766_p9 = scmp.ne.s32.totalorder %s565_s27, %s765_s28  ;;  %p771_p11 = scmp.lt.s32.totalorder %s765_s28, %s765_s28 }
  0x85   :  { %v421_v28 = vadd.f32 %v420_v21, %v406_v17  ;;  %v458_v30 = vadd.f32 %v457_v24, %v454_v23  ;;  %v464_v34 = vstv %s1198_s7  ;;  %v471_v35 = vstv %s1200_s8 }
  0x86   :  { %v435_v32 = vmul.f32 %v434_v14, %v432_v25  ;;  %v447_v36 = vmax.f32 %v446_v29, 0.0  ;;  %v472_v38 = vmul.f32 %v471_v35, %v863_v1  ;;  %v483_v39 = vstv %s1205_s9  ;;  %p772_p12 = por %p771_p11, %p770_p10 }
  0x87   :  { %v461_v37 = vadd.f32 %v460_v26, %v458_v30  ;;  %v475_v41 = vstv %s1208_s10  ;;  %v484_v42 = vmul.f32 %v483_v39, %v861_v0  ;;  %v486_v43 = vstv %s1210_s11 }
  0x88   :  { %v436_v40 = vadd.f32 %v435_v32, %v421_v28  ;;  %v450_v44 = vmul.f32 %v449_v33, %v447_v36  ;;  %v473_v46 = vadd.f32 %v472_v38, %v469_v31  ;;  %v487_v47 = vmul.f32 %v486_v43, %v863_v1  ;;  %p773_p13 = pnand %p772_p12, %p766_p9 }
  0x89   :  { %v462_v45 = vmax.f32 %v461_v37, 0.0  ;;  %v479_v48 = vstv %s1215_s12  ;;  %v490_v49 = vstv %s1217_s2  ;;  %v498_v50 = vstv %s1221_s3 }
  0x8a   :  { %v501_v51 = vstv %s1223_s13  ;;  %v451_v52 = vadd.f32 %v450_v44, %v436_v40  ;;  %v476_v54 = vadd.f32 %v475_v41, %v473_v46  ;;  %v488_v55 = vadd.f32 %v487_v47, %v484_v42 }
  0x8b   :  { %v465_v53 = vmul.f32 %v464_v34, %v462_v45  ;;  %v499_v56 = vmul.f32 %v498_v50, %v861_v0  ;;  %v502_v57 = vmul.f32 %v501_v51, %v863_v1  ;;  %v505_v58 = vstv %s1229_s14 }
  0x8c   :  { %v513_v59 = vstv %s1231_s15  ;;  %v477_v61 = vmax.f32 %v476_v54, 0.0  ;;  %v491_v62 = vadd.f32 %v490_v49, %v488_v55  ;;  %v494_v2 = vstv %s1234_s16 }
  0x8d   :  { %v466_v60 = vadd.f32 %v465_v53, %v451_v52  ;;  %v514_v63 = vmul.f32 %v513_v59, %v861_v0  ;;  %v503_v3 = vadd.f32 %v502_v57, %v499_v56  ;;  %v509_v4 = vstv %s1239_s17 }
  0x8e   :  { %v516_v5 = vstv %s1241_s18  ;;  %v480_v6 = vmul.f32 %v479_v48, %v477_v61  ;;  %v492_v7 = vmax.f32 %v491_v62, 0.0  ;;  %v528_v9 = vstv %s1245_s19 }
  0x8f   :  { %v517_v8 = vmul.f32 %v516_v5, %v863_v1  ;;  %v506_v10 = vadd.f32 %v505_v58, %v503_v3  ;;  %v520_v11 = vstv %s1250_s20  ;;  %v529_v12 = vmul.f32 %v528_v9, %v861_v0 }
  0x90   :  { %v531_v13 = vstv %s1252_s21  ;;  %v481_v14 = vadd.f32 %v480_v6, %v466_v60  ;;  %v495_v15 = vmul.f32 %v494_v2, %v492_v7  ;;  %v535_v19 = vstv %s1255_s22 }
  0x91   :  { %v518_v16 = vadd.f32 %v517_v8, %v514_v63  ;;  %v532_v17 = vmul.f32 %v531_v13, %v863_v1  ;;  %v507_v18 = vmax.f32 %v506_v10, 0.0  ;;  %v543_v20 = vstv %s1261_s23 }
  0x92   :  { %v546_v21 = vstv %s1263_s24  ;;  %v496_v22 = vadd.f32 %v495_v15, %v481_v14  ;;  %v544_v25 = vmul.f32 %v543_v20, %v861_v0  ;;  %v524_v27 = vstv %s1269_s25 }
  0x93   :  { %v521_v23 = vadd.f32 %v520_v11, %v518_v16  ;;  %v533_v24 = vadd.f32 %v532_v17, %v529_v12  ;;  %v510_v26 = vmul.f32 %v509_v4, %v507_v18  ;;  %v547_v28 = vmul.f32 %v546_v21, %v863_v1 }
  0x94   :  { %v550_v31 = vstv %s1272_s26  ;;  %v539_v33 = vstv %s1277_s4  ;;  %v554_v40 = vstv %s699_s1 }
  0x95   :  { %v522_v29 = vmax.f32 %v521_v23, 0.0  ;;  %v536_v30 = vadd.f32 %v535_v19, %v533_v24  ;;  %v511_v32 = vadd.f32 %v510_v26, %v496_v22  ;;  %v548_v34 = vadd.f32 %v547_v28, %v544_v25 }
  0x97   :  { %v525_v35 = vmul.f32 %v524_v27, %v522_v29  ;;  %v537_v36 = vmax.f32 %v536_v30, 0.0  ;;  %v551_v37 = vadd.f32 %v550_v31, %v548_v34 }
  0x99   :  { %v526_v38 = vadd.f32 %v525_v35, %v511_v32  ;;  %v540_v39 = vmul.f32 %v539_v33, %v537_v36  ;;  %v552_v41 = vmax.f32 %v551_v37, 0.0 }
  0x9b   :  { %v541_v42 = vadd.f32 %v540_v39, %v526_v38  ;;  %v555_v0 = vmul.f32 %v554_v40, %v552_v41 }
  0x9d   :  { %v556_v43 = vadd.f32 %v555_v0, %v541_v42 }
  0x9f   :  { %557 = vst [vmem:[#allocation11] sm:$0xff] %v556_v43 }
  0xa0   :  { %776 = shalt.err (!%p773_p13)
}
  0xa1   :  { %s777_s6 = scalar_lea.hbm %s1310_s5, 128 }
  0xa2   :  { %p778_p0 = scmp.ne.s32.totalorder %s1310_s5, %s777_s6  ;;  %p781_p1 = scmp.lt.u32.totalorder %s777_s6, %s1310_s5 }
  0xa4   :  { %p783_p2 = pnand %p781_p1, %p778_p0 }
  0xa6   :  { %786 = shalt.err (!%p783_p2)
}
  0xa7   :  { %567 = dma.vmem_to_hbm [thread:$0]  %s565_s27, 128, %s1310_s5, [#allocation5]  }
  0xa8   :  { %793 = dma.done.wait [#allocation5], 128  }
  0xa9   :  { %794 = vsyncadd [#allocation5], 4294967168 }
  0xaa   :  { %571 = vsyncpa [#allocation4], 1 }
  0xab   :  { %572 = vsyncpa [#allocation5], 1 }
  0xac   :  { %573 = vsyncpa [#allocation6], 1 }
  0xad   :  { %574 = vsyncpa [#allocation8], 1 }

</bundles_post_ra>
